<compile_context>
chip_gen: v6e
topology: v6e:2x2x1
jax: 0.10.0
libtpu: 0.0.40
codegen_flags: <defaults>
</compile_context>

<pallas_src>
import jax
import jax.numpy as jnp
from jax.experimental import pallas as pl
from jax.experimental.pallas import tpu as pltpu


def _round_up(v, m):
    return (v + m - 1) // m * m


# ----------------------------- Pallas kernel --------------------------------

def _encoder_block_kernel(xs_ref, xcol_ref, w1_ref, b1_ref, w2_ref, b2_ref,
                          o_ref):
    # branch1: 1x1 stride-2 conv + BN (spatial subsample done by the wrapper).
    br1 = jnp.dot(xs_ref[...], w1_ref[...],
                  preferred_element_type=jnp.float32) + b1_ref[...]
    # branch2: convA+BN -> convB(3x3,s2,p1)+BN -> convC+BN folded offline into
    # one (9*(Cin+1), Cout) matrix applied to im2col rows, then ReLU.
    br2 = jnp.dot(xcol_ref[...], w2_ref[...],
                  preferred_element_type=jnp.float32) + b2_ref[...]
    o_ref[...] = br1 + jnp.maximum(br2, 0.0)


def _fused_call(xs, xcol, w1, b1, w2, b2, tm):
    rows, cin = xs.shape
    kdim = xcol.shape[1]
    cout = w1.shape[1]
    assert rows % tm == 0
    return pl.pallas_call(
        _encoder_block_kernel,
        out_shape=jax.ShapeDtypeStruct((rows, cout), jnp.float32),
        grid_spec=pltpu.PrefetchScalarGridSpec(
            num_scalar_prefetch=0,
            grid=(rows // tm,),
            in_specs=[
                pl.BlockSpec((tm, cin), lambda i: (i, 0)),    # xs   (tiled)
                pl.BlockSpec((tm, kdim), lambda i: (i, 0)),   # xcol (tiled)
                pl.BlockSpec((cin, cout), lambda i: (0, 0)),  # w1   (resident)
                pl.BlockSpec((1, cout), lambda i: (0, 0)),    # b1
                pl.BlockSpec((kdim, cout), lambda i: (0, 0)), # w2   (resident)
                pl.BlockSpec((1, cout), lambda i: (0, 0)),    # b2
            ],
            out_specs=pl.BlockSpec((tm, cout), lambda i: (i, 0)),
        ),
        compiler_params=pltpu.CompilerParams(
            dimension_semantics=("parallel",),     # megacore on v7x
            vmem_limit_bytes=32 * 1024 * 1024,     # safe on v5e/v6e/v7x
        ),
    )(xs, xcol, w1, b1, w2, b2)


# ----------------------------- parameters -----------------------------------

def make_params(key, cin=128, cout=256, eps=1e-5):
    ks = jax.random.split(key, 8)

    def conv_w(k, co, ci, ksz):
        fan = ci * ksz * ksz
        return jax.random.normal(k, (co, ci, ksz, ksz), jnp.float32) / jnp.sqrt(fan)

    def bn_params(k, c):
        k1, k2, k3, k4 = jax.random.split(k, 4)
        gamma = 1.0 + 0.1 * jax.random.normal(k1, (c,), jnp.float32)
        beta = 0.1 * jax.random.normal(k2, (c,), jnp.float32)
        mean = 0.1 * jax.random.normal(k3, (c,), jnp.float32)
        var = 0.5 + jax.random.uniform(k4, (c,), jnp.float32)
        return gamma, beta, mean, var

    def fold(w, bn):
        gamma, beta, mean, var = bn
        scale = gamma / jnp.sqrt(var + eps)
        shift = beta - mean * scale
        return w * scale[:, None, None, None], shift

    # eval-mode BN folded per conv (f32, OIHW) — also used by the reference.
    w1f, b1 = fold(conv_w(ks[0], cout, cin, 1), bn_params(ks[1], cout))
    waf, ba = fold(conv_w(ks[2], cout, cin, 1), bn_params(ks[3], cout))
    wbf, bb = fold(conv_w(ks[4], cout, cout, 3), bn_params(ks[5], cout))
    wcf, bc = fold(conv_w(ks[6], cout, cout, 1), bn_params(ks[7], cout))

    ref = {"w1": w1f, "b1": b1, "wa": waf, "ba": ba,
           "wb": wbf, "bb": bb, "wc": wcf, "bc": bc}

    # ---- exact offline fold of the (linear) branch2 chain ------------------
    wa_m = waf[:, :, 0, 0].T                                   # (cin,  cout)
    wc_m = wcf[:, :, 0, 0].T                                   # (cout, cout)
    # constant-1 channel carries convA's BN shift (matches zero padding of y).
    wa_aug = jnp.concatenate([wa_m, ba[None, :]], axis=0)      # (cin+1, cout)
    w2_taps = []
    for kh in range(3):
        for kw in range(3):
            wb_tap = wbf[:, :, kh, kw].T                       # (cout, cout)
            w2_taps.append(wa_aug @ (wb_tap @ wc_m))           # (cin+1, cout)
    w2 = jnp.concatenate(w2_taps, axis=0)                      # (9*(cin+1), cout)
    b2 = bb @ wc_m + bc                                        # (cout,)

    kern = {
        "w1": w1f[:, :, 0, 0].T.astype(jnp.bfloat16),          # (cin, cout)
        "b1": b1.reshape(1, cout).astype(jnp.float32),
        "w2": w2.astype(jnp.bfloat16),                         # (9*(cin+1), cout)
        "b2": b2.reshape(1, cout).astype(jnp.float32),
    }
    return kern, ref


# ----------------------------- forward ---------------------------------------

def encoder_block_forward(kparams, x_nchw, *, tm=512):
    N, Cin, H, W = x_nchw.shape
    Ho = (H + 1) // 2
    Wo = (W + 1) // 2
    Cout = kparams["w1"].shape[1]

    x = jnp.transpose(x_nchw, (0, 2, 3, 1)).astype(jnp.bfloat16)   # NHWC bf16

    # branch1 input: stride-2 spatial subsample flattened to matmul rows.
    x_s = x[:, ::2, ::2, :].reshape(N * Ho * Wo, Cin)

    # branch2 input: im2col of x augmented with a constant-1 channel
    # (3x3 / stride-2 / pad-1 taps), bf16 — pure data movement in XLA.
    ones = jnp.ones((N, H, W, 1), jnp.bfloat16)
    x_aug = jnp.concatenate([x, ones], axis=-1)                    # (N,H,W,Cin+1)
    x_pad = jnp.pad(x_aug, ((0, 0), (1, 1), (1, 1), (0, 0)))
    taps = [x_pad[:, kh:kh + 2 * Ho - 1:2, kw:kw + 2 * Wo - 1:2, :]
            for kh in range(3) for kw in range(3)]
    x_col = jnp.stack(taps, axis=3).reshape(N * Ho * Wo, 9 * (Cin + 1))

    # ragged row handling: adaptive tile + zero padding (sliced off below).
    rows = N * Ho * Wo
    tm_eff = min(tm, _round_up(rows, 8))
    rows_p = _round_up(rows, tm_eff)
    if rows_p != rows:
        x_s = jnp.pad(x_s, ((0, rows_p - rows), (0, 0)))
        x_col = jnp.pad(x_col, ((0, rows_p - rows), (0, 0)))

    out = _fused_call(x_s, x_col,
                      kparams["w1"], kparams["b1"],
                      kparams["w2"], kparams["b2"], tm_eff)
    out = out[:rows].reshape(N, Ho, Wo, Cout)
    # TODO(synk): skip this transpose (keep NHWC) if the consumer accepts it;
    #             it costs one extra pass over the output tensor.
    return jnp.transpose(out, (0, 3, 1, 2))                        # NCHW


# ----------------------------- pure-XLA reference -----------------------------

def reference_forward(ref_params, x_nchw):
    def conv_bn(x, w, shift, stride, pad):
        y = jax.lax.conv_general_dilated(
            x, w, window_strides=(stride, stride),
            padding=[(pad, pad), (pad, pad)],
            dimension_numbers=("NCHW", "OIHW", "NCHW"))
        return y + shift[None, :, None, None]

    rp = ref_params
    x1 = conv_bn(x_nchw, rp["w1"], rp["b1"], 2, 0)
    x2 = conv_bn(x_nchw, rp["wa"], rp["ba"], 1, 0)
    x2 = conv_bn(x2, rp["wb"], rp["bb"], 2, 1)
    x2 = conv_bn(x2, rp["wc"], rp["bc"], 1, 0)
    return x1 + jnp.maximum(x2, 0.0)


# ----------------------------- demo -------------------------------------------

if __name__ == "__main__":
    key = jax.random.PRNGKey(0)
    pkey, xkey = jax.random.split(key)

    IN_C, OUT_C = 128, 256
    N, H, W = 2, 16, 16

    kparams, ref_params = make_params(pkey, IN_C, OUT_C)
    x = jax.random.normal(xkey, (N, IN_C, H, W), jnp.float32)

    out = jax.jit(encoder_block_forward)(kparams, x)
    out = jax.block_until_ready(out)

    assert out.shape == (N, OUT_C, (H + 1) // 2, (W + 1) // 2), out.shape
    assert bool(jnp.all(jnp.isfinite(out)))

    # numerical check against an f32 XLA reference of the original module.
    ref = jax.jit(reference_forward)(ref_params, x)
    ref = jax.block_until_ready(ref)
    err = float(jnp.max(jnp.abs(out - ref)))
    scale = float(jnp.max(jnp.abs(ref)))
    assert err <= 0.05 * scale + 0.05, (err, scale)

    print("KERNEL_OK")
</pallas_src>

<mosaic_0001>
module attributes {stable_mosaic.version = 11 : i64} {
  func.func @_encoder_block_kernel(%arg0: i32, %arg1: memref<128x128xbf16, #tpu.memory_space<vmem>>, %arg2: memref<128x1161xbf16, #tpu.memory_space<vmem>>, %arg3: memref<128x256xbf16, #tpu.memory_space<vmem>>, %arg4: memref<1x256xf32, #tpu.memory_space<vmem>>, %arg5: memref<1161x256xbf16, #tpu.memory_space<vmem>>, %arg6: memref<1x256xf32, #tpu.memory_space<vmem>>, %arg7: memref<128x256xf32, #tpu.memory_space<vmem>>) attributes {dimension_semantics = [#tpu.dimension_semantics<parallel>], iteration_bounds = array<i64: 1>, scalar_prefetch = 0 : i64, scratch_operands = 0 : i64, tpu.core_type = #tpu.core_type<tc>, window_params = [{transform_indices = @transform_0, window_bounds = array<i64: 128, 128>}, {transform_indices = @transform_1, window_bounds = array<i64: 128, 1161>}, {pipeline_mode = #tpu.pipeline_mode<synchronous>, transform_indices = @transform_2, window_bounds = array<i64: 128, 256>}, {pipeline_mode = #tpu.pipeline_mode<synchronous>, transform_indices = @transform_3, window_bounds = array<i64: 1, 256>}, {pipeline_mode = #tpu.pipeline_mode<synchronous>, transform_indices = @transform_4, window_bounds = array<i64: 1161, 256>}, {pipeline_mode = #tpu.pipeline_mode<synchronous>, transform_indices = @transform_5, window_bounds = array<i64: 1, 256>}, {transform_indices = @transform_6, window_bounds = array<i64: 128, 256>}]} {
    %c0 = arith.constant 0 : index
    %c0_0 = arith.constant 0 : index
    %0 = vector.load %arg1[%c0, %c0_0] : memref<128x128xbf16, #tpu.memory_space<vmem>>, vector<128x128xbf16>
    %c0_1 = arith.constant 0 : index
    %c0_2 = arith.constant 0 : index
    %1 = vector.load %arg3[%c0_1, %c0_2] : memref<128x256xbf16, #tpu.memory_space<vmem>>, vector<128x256xbf16>
    %cst = arith.constant dense<0.000000e+00> : vector<128x256xf32>
    %2 = tpu.matmul %0, %1, %cst {dimension_numbers = #tpu.dot_dimension_numbers<[1], [0], [0], [1], [0, 0, 1, 1], [], []>} : vector<128x128xbf16>, vector<128x256xbf16>, vector<128x256xf32> -> vector<128x256xf32>
    %c0_3 = arith.constant 0 : index
    %c0_4 = arith.constant 0 : index
    %3 = vector.load %arg4[%c0_3, %c0_4] : memref<1x256xf32, #tpu.memory_space<vmem>>, vector<1x256xf32>
    %4 = vector.broadcast %3 : vector<1x256xf32> to vector<128x256xf32>
    %5 = arith.addf %2, %4 : vector<128x256xf32>
    %c0_5 = arith.constant 0 : index
    %c0_6 = arith.constant 0 : index
    %6 = vector.load %arg2[%c0_5, %c0_6] : memref<128x1161xbf16, #tpu.memory_space<vmem>>, vector<128x1161xbf16>
    %c0_7 = arith.constant 0 : index
    %c0_8 = arith.constant 0 : index
    %7 = vector.load %arg5[%c0_7, %c0_8] : memref<1161x256xbf16, #tpu.memory_space<vmem>>, vector<1161x256xbf16>
    %cst_9 = arith.constant dense<0.000000e+00> : vector<128x256xf32>
    %8 = tpu.matmul %6, %7, %cst_9 {dimension_numbers = #tpu.dot_dimension_numbers<[1], [0], [0], [1], [0, 0, 1, 1], [], []>} : vector<128x1161xbf16>, vector<1161x256xbf16>, vector<128x256xf32> -> vector<128x256xf32>
    %c0_10 = arith.constant 0 : index
    %c0_11 = arith.constant 0 : index
    %9 = vector.load %arg6[%c0_10, %c0_11] : memref<1x256xf32, #tpu.memory_space<vmem>>, vector<1x256xf32>
    %10 = vector.broadcast %9 : vector<1x256xf32> to vector<128x256xf32>
    %11 = arith.addf %8, %10 : vector<128x256xf32>
    %cst_12 = arith.constant 0.000000e+00 : f32
    %12 = vector.broadcast %cst_12 : f32 to vector<128x256xf32>
    %13 = arith.maximumf %11, %12 : vector<128x256xf32>
    %14 = arith.addf %5, %13 : vector<128x256xf32>
    %c0_13 = arith.constant 0 : index
    %c0_14 = arith.constant 0 : index
    %15 = vector.load %arg7[%c0_13, %c0_14] : memref<128x256xf32, #tpu.memory_space<vmem>>, vector<128x256xf32>
    tpu.vector_store %arg7[%c0_13, %c0_14], %14 {strides = array<i32>} : memref<128x256xf32, #tpu.memory_space<vmem>>, vector<128x256xf32>,
    return
  }
  func.func @transform_0(%arg0: i32) -> (i32, i32) {
    %c0_i32 = arith.constant 0 : i32
    %c0_i32_0 = arith.constant 0 : i32
    return %arg0, %c0_i32 : i32, i32
  }
  func.func @transform_1(%arg0: i32) -> (i32, i32) {
    %c0_i32 = arith.constant 0 : i32
    %c0_i32_0 = arith.constant 0 : i32
    return %arg0, %c0_i32 : i32, i32
  }
  func.func @transform_2(%arg0: i32) -> (i32, i32) {
    %c0_i32 = arith.constant 0 : i32
    %c0_i32_0 = arith.constant 0 : i32
    %c0_i32_1 = arith.constant 0 : i32
    return %c0_i32, %c0_i32_0 : i32, i32
  }
  func.func @transform_3(%arg0: i32) -> (i32, i32) {
    %c0_i32 = arith.constant 0 : i32
    %c0_i32_0 = arith.constant 0 : i32
    %c0_i32_1 = arith.constant 0 : i32
    return %c0_i32, %c0_i32_0 : i32, i32
  }
  func.func @transform_4(%arg0: i32) -> (i32, i32) {
    %c0_i32 = arith.constant 0 : i32
    %c0_i32_0 = arith.constant 0 : i32
    %c0_i32_1 = arith.constant 0 : i32
    return %c0_i32, %c0_i32_0 : i32, i32
  }
  func.func @transform_5(%arg0: i32) -> (i32, i32) {
    %c0_i32 = arith.constant 0 : i32
    %c0_i32_0 = arith.constant 0 : i32
    %c0_i32_1 = arith.constant 0 : i32
    return %c0_i32, %c0_i32_0 : i32, i32
  }
  func.func @transform_6(%arg0: i32) -> (i32, i32) {
    %c0_i32 = arith.constant 0 : i32
    %c0_i32_0 = arith.constant 0 : i32
    return %arg0, %c0_i32 : i32, i32
  }
}

</mosaic_0001>

<bundles_post_ra>
// kernel: encoder_block_forward.1
= control target key start
LH: loop header
LB: loop body
LE: loop exit
PB: predicated region body
PF: predicated region fallthrough
CT: control target
= control target key end

     0   :  { %v3054_v2 = vmov 0   ;;  %vm1693_vm0 = vcmask 1043456   ;;  %vm1694_vm1 = vcmask 1044480   ;;  %s4435_s0 = inlined_call_operand.vmem [shape: bf16[128,128], index: 0, kind: input, shape index: {}]   ;;  %s4436_s1 = inlined_call_operand.vmem [shape: bf16[128,1161], index: 1, kind: input, shape index: {}]   ;;  %s4437_s2 = inlined_call_operand.vmem [shape: bf16[128,256], index: 2, kind: input, shape index: {}]   ;;  %s4438_s3 = inlined_call_operand.vmem [shape: f32[1,256], index: 3, kind: input, shape index: {}]   ;;  %s4439_s4 = inlined_call_operand.vmem [shape: bf16[1161,256], index: 4, kind: input, shape index: {}]   ;;  %s4440_s5 = inlined_call_operand.vmem [shape: f32[1,256], index: 5, kind: input, shape index: {}]   ;;  %s4441_s6 = inlined_call_operand.hbm [shape: f32[128,256], index: 6, kind: output, shape index: {}]  }
   0x1   :  { %v2661_v0 = vld [vmem:[%s4437_s2 + $0x74] ss:$8 sps:$4 sm:$0xff]   ;;  %229 = vmatprep.mubr.bf16.mxu0 %v3054_v2  ;;  %v2665_v3 = vld [vmem:[%s4437_s2 + $0x70] ss:$8 sps:$4 sm:$0xff]   ;;  %v2667_v5 = vld [vmem:[%s4437_s2 + $0x64] ss:$8 sps:$4 sm:$0xff]  }
   0x2   :  { %v2663_v1 = vld [vmem:[%s4439_s4 + $0x74] ss:$8 sps:$4 sm:$0xff]   ;;  %197 = vmatprep.subr.bf16.mxu0 %v2661_v0  ;;  %v2666_v4 = vld [vmem:[%s4439_s4 + $0x70] ss:$8 sps:$4 sm:$0xff]   ;;  %v2669_v6 = vld [vmem:[%s4439_s4 + $0x64] ss:$8 sps:$4 sm:$0xff]  }
   0x3   :  { %1703 = vmatprep.subr.bf16.mxu1 %v2663_v1  ;;  %198 = vmatpush1.bf16.msra.mxu0 %v2665_v3  ;;  %v2671_v7 = vld [vmem:[%s4437_s2 + $0x60] ss:$8 sps:$4 sm:$0xff]   ;;  %v2673_v9 = vld [vmem:[%s4437_s2 + $0x54] ss:$8 sps:$4 sm:$0xff]   ;;  %v2677_v11 = vld [vmem:[%s4437_s2 + $0x50] ss:$8 sps:$4 sm:$0xff]  }
   0x4   :  { %1704 = vmatpush1.bf16.msra.mxu1 %v2666_v4  ;;  %199 = vmatprep.subr.bf16.mxu0 %v2667_v5  ;;  %v2672_v8 = vld [vmem:[%s4439_s4 + $0x60] ss:$8 sps:$4 sm:$0xff]   ;;  %v2675_v10 = vld [vmem:[%s4439_s4 + $0x54] ss:$8 sps:$4 sm:$0xff]   ;;  %v2678_v12 = vld [vmem:[%s4439_s4 + $0x50] ss:$8 sps:$4 sm:$0xff]  }
   0x5   :  { %1705 = vmatprep.subr.bf16.mxu1 %v2669_v6  ;;  %v2679_v13 = vld [vmem:[%s4437_s2 + $0x44] ss:$8 sps:$4 sm:$0xff]   ;;  %v2683_v15 = vld [vmem:[%s4437_s2 + $0x40] ss:$8 sps:$4 sm:$0xff]   ;;  %v2685_v17 = vld [vmem:[%s4437_s2 + $0x34] ss:$8 sps:$4 sm:$0xff]  }
   0x6   :  { %v2681_v14 = vld [vmem:[%s4439_s4 + $0x44] ss:$8 sps:$4 sm:$0xff]   ;;  %v2684_v16 = vld [vmem:[%s4439_s4 + $0x40] ss:$8 sps:$4 sm:$0xff]   ;;  %v2687_v18 = vld [vmem:[%s4439_s4 + $0x34] ss:$8 sps:$4 sm:$0xff]  }
   0x7   :  { %200 = vmatpush1.bf16.msra.mxu0 %v2671_v7  ;;  %v2689_v19 = vld [vmem:[%s4437_s2 + $0x30] ss:$8 sps:$4 sm:$0xff]   ;;  %v2691_v21 = vld [vmem:[%s4437_s2 + $0x24] ss:$8 sps:$4 sm:$0xff]   ;;  %v2695_v23 = vld [vmem:[%s4437_s2 + $0x20] ss:$8 sps:$4 sm:$0xff]  }
   0x8   :  { %1706 = vmatpush1.bf16.msra.mxu1 %v2672_v8  ;;  %201 = vmatprep.subr.bf16.mxu0 %v2673_v9  ;;  %v2690_v20 = vld [vmem:[%s4439_s4 + $0x30] ss:$8 sps:$4 sm:$0xff]   ;;  %v2693_v22 = vld [vmem:[%s4439_s4 + $0x24] ss:$8 sps:$4 sm:$0xff]   ;;  %v2696_v24 = vld [vmem:[%s4439_s4 + $0x20] ss:$8 sps:$4 sm:$0xff]  }
   0x9   :  { %1707 = vmatprep.subr.bf16.mxu1 %v2675_v10  ;;  %v2697_v25 = vld [vmem:[%s4437_s2 + $0x14] ss:$8 sps:$4 sm:$0xff]   ;;  %v2701_v27 = vld [vmem:[%s4437_s2 + $0x10] ss:$8 sps:$4 sm:$0xff]   ;;  %v2703_v29 = vld [vmem:[%s4437_s2 + $0x4] ss:$8 sps:$4 sm:$0xff]  }
   0xa   :  { %v2699_v26 = vld [vmem:[%s4439_s4 + $0x14] ss:$8 sps:$4 sm:$0xff]   ;;  %v2702_v28 = vld [vmem:[%s4439_s4 + $0x10] ss:$8 sps:$4 sm:$0xff]   ;;  %v2705_v30 = vld [vmem:[%s4439_s4 + $0x4] ss:$8 sps:$4 sm:$0xff]  }
   0xb   :  { %202 = vmatpush1.bf16.msra.mxu0 %v2677_v11  ;;  %v2707_v31 = vld [vmem:[%s4437_s2] ss:$8 sps:$4 sm:$0xff]   ;;  %v2710_v33 = vld [vmem:[%s4439_s4 + $0xf4] ss:$8 sps:$4 sm:$0xff]   ;;  %v2712_v36 = vld [vmem:[%s4439_s4 + $0x170] ss:$8 sps:$4 sm:$0xff]  }
   0xc   :  { %1708 = vmatpush1.bf16.msra.mxu1 %v2678_v12  ;;  %203 = vmatprep.subr.bf16.mxu0 %v2679_v13  ;;  %v2708_v32 = vld [vmem:[%s4439_s4] ss:$8 sps:$4 sm:$0xff]   ;;  %v2714_v34 = vld [vmem:[%s4439_s4 + $0x174] ss:$8 sps:$4 sm:$0xff]   ;;  %v2715_v37 = vld [vmem:[%s4439_s4 + $0xf0] ss:$8 sps:$4 sm:$0xff]  }
   0xd   :  { %1709 = vmatprep.subr.bf16.mxu1 %v2681_v14  ;;  %v2709_v35 = vld [vmem:[%s4435_s0] sm:$0xff]   ;;  %v2723_v42 = vld [vmem:[%s4439_s4 + $0xd4] ss:$8 sps:$4 sm:$0xff]   ;;  %v2722_v44 = vld [vmem:[%s4435_s0 + $0x8] sm:$0xff]  }
   0xe   :  { %v2716_v38 = vld [vmem:[%s4439_s4 + $0xe4] ss:$8 sps:$4 sm:$0xff]   ;;  %v2718_v40 = vld [vmem:[%s4439_s4 + $0x160] ss:$8 sps:$4 sm:$0xff]   ;;  %v2727_v43 = vld [vmem:[%s4439_s4 + $0x154] ss:$8 sps:$4 sm:$0xff]  }
   0xf   :  { %204 = vmatpush1.bf16.msra.mxu0 %v2683_v15  ;;  %v2720_v39 = vld [vmem:[%s4439_s4 + $0x164] ss:$8 sps:$4 sm:$0xff]   ;;  %v2721_v41 = vld [vmem:[%s4439_s4 + $0xe0] ss:$8 sps:$4 sm:$0xff]   ;;  %v2725_v45 = vld [vmem:[%s4439_s4 + $0x150] ss:$8 sps:$4 sm:$0xff]  }
  0x10   :  { %1710 = vmatpush1.bf16.msra.mxu1 %v2684_v16  ;;  %205 = vmatprep.subr.bf16.mxu0 %v2685_v17  ;;  %v2728_v46 = vld [vmem:[%s4439_s4 + $0xd0] ss:$8 sps:$4 sm:$0xff]   ;;  %v2729_v47 = vld [vmem:[%s4439_s4 + $0xc4] ss:$8 sps:$4 sm:$0xff]   ;;  %v2731_v49 = vld [vmem:[%s4439_s4 + $0x140] ss:$8 sps:$4 sm:$0xff]  }
  0x11   :  { %1711 = vmatprep.subr.bf16.mxu1 %v2687_v18  ;;  %v2733_v48 = vld [vmem:[%s4439_s4 + $0x144] ss:$8 sps:$4 sm:$0xff]   ;;  %v2734_v50 = vld [vmem:[%s4439_s4 + $0xc0] ss:$8 sps:$4 sm:$0xff]   ;;  %v2736_v51 = vld [vmem:[%s4439_s4 + $0xb4] ss:$8 sps:$4 sm:$0xff]  }
  0x12   :  { %v2740_v52 = vld [vmem:[%s4439_s4 + $0x134] ss:$8 sps:$4 sm:$0xff]   ;;  %v2738_v54 = vld [vmem:[%s4439_s4 + $0x130] ss:$8 sps:$4 sm:$0xff]   ;;  %v2763_v56 = vld [vmem:[%s4436_s1 + $0x4] ss:$40 sps:$4 sm:$0xff]  }
  0x13   :  { %206 = vmatpush1.bf16.msra.mxu0 %v2689_v19  ;;  %v2735_v53 = vld [vmem:[%s4435_s0 + $0x10] sm:$0xff]   ;;  %v2742_v57 = vld [vmem:[%s4439_s4 + $0xa4] ss:$8 sps:$4 sm:$0xff]   ;;  %1735 = vmatprep.mubr.bf16.mxu1 %v2763_v56  ;;  %v2744_v59 = vld [vmem:[%s4439_s4 + $0x120] ss:$8 sps:$4 sm:$0xff]  }
  0x14   :  { %1712 = vmatpush1.bf16.msra.mxu1 %v2690_v20  ;;  %207 = vmatprep.subr.bf16.mxu0 %v2691_v21  ;;  %v2741_v55 = vld [vmem:[%s4439_s4 + $0xb0] ss:$8 sps:$4 sm:$0xff]   ;;  %v2746_v58 = vld [vmem:[%s4439_s4 + $0x124] ss:$8 sps:$4 sm:$0xff]   ;;  %v2747_v60 = vld [vmem:[%s4439_s4 + $0xa0] ss:$8 sps:$4 sm:$0xff]  }
  0x15   :  { %1713 = vmatprep.subr.bf16.mxu1 %v2693_v22  ;;  %v2749_v61 = vld [vmem:[%s4439_s4 + $0x94] ss:$8 sps:$4 sm:$0xff]   ;;  %v2751_v0 = vld [vmem:[%s4439_s4 + $0x110] ss:$8 sps:$4 sm:$0xff]   ;;  %v2755_v3 = vld [vmem:[%s4439_s4 + $0x84] ss:$8 sps:$4 sm:$0xff]  }
  0x16   :  { %v2753_v62 = vld [vmem:[%s4439_s4 + $0x114] ss:$8 sps:$4 sm:$0xff]   ;;  %v2754_v1 = vld [vmem:[%s4439_s4 + $0x90] ss:$8 sps:$4 sm:$0xff]   ;;  %v2759_v4 = vld [vmem:[%s4439_s4 + $0x104] ss:$8 sps:$4 sm:$0xff]  }
  0x17   :  { %208 = vmatpush1.bf16.msra.mxu0 %v2695_v23  ;;  %v2748_v63 = vld [vmem:[%s4435_s0 + $0x18] sm:$0xff]   ;;  %v2757_v5 = vld [vmem:[%s4439_s4 + $0x100] ss:$8 sps:$4 sm:$0xff]   ;;  %v2773_v13 = vld [vmem:[%s4439_s4 + $0x1e4] ss:$8 sps:$4 sm:$0xff]  }
  0x18   :  { %1714 = vmatpush1.bf16.msra.mxu1 %v2696_v24  ;;  %209 = vmatprep.subr.bf16.mxu0 %v2697_v25  ;;  %v2760_v6 = vld [vmem:[%s4439_s4 + $0x80] ss:$8 sps:$4 sm:$0xff]   ;;  %v2767_v8 = vld [vmem:[%s4439_s4 + $0x1f4] ss:$8 sps:$4 sm:$0xff]   ;;  %v2765_v11 = vld [vmem:[%s4439_s4 + $0x1f0] ss:$8 sps:$4 sm:$0xff]  }
  0x19   :  { %1715 = vmatprep.subr.bf16.mxu1 %v2699_v26  ;;  %v2761_v7 = vld [vmem:[%s4436_s1] ss:$40 sps:$4 sm:$0xff]   ;;  %v2770_v9 = vld [vmem:[%s4439_s4 + $0x274] ss:$8 sps:$4 sm:$0xff]   ;;  %v2768_v12 = vld [vmem:[%s4439_s4 + $0x270] ss:$8 sps:$4 sm:$0xff]  }
  0x1a   :  { %v2764_v10 = vld [vmem:[%s4435_s0 + $0x20] sm:$0xff]   ;;  %v2777_v15 = vld [vmem:[%s4436_s1 + $0x54] ss:$40 sps:$4 sm:$0xff]   ;;  %v2779_v18 = vld [vmem:[%s4435_s0 + $0x28] sm:$0xff]  }
  0x1b   :  { %210 = vmatpush1.bf16.msra.mxu0 %v2701_v27  ;;  %v2776_v14 = vld [vmem:[%s4439_s4 + $0x264] ss:$8 sps:$4 sm:$0xff]   ;;  %v2771_v16 = vld [vmem:[%s4439_s4 + $0x1e0] ss:$8 sps:$4 sm:$0xff]   ;;  %v2783_v19 = vld [vmem:[%s4439_s4 + $0x1d4] ss:$8 sps:$4 sm:$0xff]  }
  0x1c   :  { %1716 = vmatpush1.bf16.msra.mxu1 %v2702_v28  ;;  %211 = vmatprep.subr.bf16.mxu0 %v2703_v29  ;;  %v2774_v17 = vld [vmem:[%s4439_s4 + $0x260] ss:$8 sps:$4 sm:$0xff]   ;;  %v2786_v20 = vld [vmem:[%s4439_s4 + $0x254] ss:$8 sps:$4 sm:$0xff]   ;;  %v2780_v21 = vld [vmem:[%s4436_s1 + $0x50] ss:$40 sps:$4 sm:$0xff]  }
  0x1d   :  { %1717 = vmatprep.subr.bf16.mxu1 %v2705_v30  ;;  %v2781_v22 = vld [vmem:[%s4439_s4 + $0x1d0] ss:$8 sps:$4 sm:$0xff]   ;;  %v2789_v24 = vld [vmem:[%s4439_s4 + $0x1c4] ss:$8 sps:$4 sm:$0xff]   ;;  %v2787_v27 = vld [vmem:[%s4439_s4 + $0x1c0] ss:$8 sps:$4 sm:$0xff]  }
  0x1e   :  { %v2784_v23 = vld [vmem:[%s4439_s4 + $0x250] ss:$8 sps:$4 sm:$0xff]   ;;  %v2792_v25 = vld [vmem:[%s4439_s4 + $0x244] ss:$8 sps:$4 sm:$0xff]   ;;  %v2790_v28 = vld [vmem:[%s4439_s4 + $0x240] ss:$8 sps:$4 sm:$0xff]  }
  0x1f   :  { %212 = vmatpush1.bf16.msra.mxu0 %v2707_v31  ;;  %v2793_v26 = vld [vmem:[%s4436_s1 + $0xa4] ss:$40 sps:$4 sm:$0xff]   ;;  %v2799_v29 = vld [vmem:[%s4439_s4 + $0x1b4] ss:$8 sps:$4 sm:$0xff]   ;;  %v2834_v56 = vld [vmem:[%s4439_s4 + $0x370] ss:$8 sps:$4 sm:$0xff]  }
  0x20   :  { %1718 = vmatpush1.bf16.msra.mxu1 %v2708_v32  ;;  %1816 = vmatprep.subr.bf16.mxu0 %v2714_v34  ;;  %v2802_v30 = vld [vmem:[%s4439_s4 + $0x234] ss:$8 sps:$4 sm:$0xff]   ;;  %v2796_v32 = vld [vmem:[%s4436_s1 + $0xa0] ss:$40 sps:$4 sm:$0xff]   ;;  %v2800_v34 = vld [vmem:[%s4439_s4 + $0x230] ss:$8 sps:$4 sm:$0xff]  }
  0x21   :  { %1719 = vmatprep.subr.bf16.mxu1 %v2710_v33  ;;  %v2795_v31 = vld [vmem:[%s4435_s0 + $0x30] sm:$0xff]  }
  0x22   :  { %230 = vmatmul.mubr.bf16.vlgmr.msra.gmra.mxu0 %v2709_v35  ;;  %v2797_v33 = vld [vmem:[%s4439_s4 + $0x1b0] ss:$8 sps:$4 sm:$0xff]   ;;  %v2805_v35 = vld [vmem:[%s4439_s4 + $0x1a4] ss:$8 sps:$4 sm:$0xff]  }
  0x23   :  { %1817 = vmatpush1.bf16.msra.mxu0 %v2712_v36  ;;  %239 = vmatprep.mubr.bf16.mxu0 %v3054_v2  ;;  %v2808_v36 = vld [vmem:[%s4439_s4 + $0x224] ss:$8 sps:$4 sm:$0xff]  }
  0x24   :  { %1720 = vmatpush2.bf16.msra.mxu1 %v2715_v37  ;;  %1818 = vmatprep.subr.bf16.mxu0 %v2720_v39  ;;  %v2809_v37 = vld [vmem:[%s4436_s1 + $0xf4] ss:$40 sps:$4 sm:$0xff]   ;;  %v2806_v39 = vld [vmem:[%s4439_s4 + $0x220] ss:$8 sps:$4 sm:$0xff]  }
  0x25   :  { %1721 = vmatprep.subr.bf16.mxu1 %v2716_v38  ;;  %v2803_v38 = vld [vmem:[%s4439_s4 + $0x1a0] ss:$8 sps:$4 sm:$0xff]  }
  0x27   :  { %1819 = vmatpush1.bf16.msra.mxu0 %v2718_v40  ;;  %v2815_v40 = vld [vmem:[%s4439_s4 + $0x194] ss:$8 sps:$4 sm:$0xff]  }
  0x28   :  { %1722 = vmatpush2.bf16.msra.mxu1 %v2721_v41  ;;  %1820 = vmatprep.subr.bf16.mxu0 %v2727_v43  ;;  %v2818_v41 = vld [vmem:[%s4439_s4 + $0x214] ss:$8 sps:$4 sm:$0xff]   ;;  %v2812_v43 = vld [vmem:[%s4436_s1 + $0xf0] ss:$40 sps:$4 sm:$0xff]  }
  0x29   :  { %1723 = vmatprep.subr.bf16.mxu1 %v2723_v42  ;;  %v2811_v42 = vld [vmem:[%s4435_s0 + $0x38] sm:$0xff]  }
  0x2a   :  { %240 = vmatmul.mubr.bf16.gmra.mxu0 %v2722_v44  ;;  %v2813_v44 = vld [vmem:[%s4439_s4 + $0x190] ss:$8 sps:$4 sm:$0xff]  }
  0x2b   :  { %1821 = vmatpush1.bf16.msra.mxu0 %v2725_v45  ;;  %249 = vmatprep.mubr.bf16.mxu0 %v3054_v2  ;;  %v2816_v45 = vld [vmem:[%s4439_s4 + $0x210] ss:$8 sps:$4 sm:$0xff]  }
  0x2c   :  { %1724 = vmatpush2.bf16.msra.mxu1 %v2728_v46  ;;  %1822 = vmatprep.subr.bf16.mxu0 %v2733_v48  ;;  %v2824_v46 = vld [vmem:[%s4439_s4 + $0x204] ss:$8 sps:$4 sm:$0xff]  }
  0x2d   :  { %1725 = vmatprep.subr.bf16.mxu1 %v2729_v47  ;;  %v2825_v47 = vld [vmem:[%s4436_s1 + $0x144] ss:$40 sps:$4 sm:$0xff]  }
  0x2e   :  { %v2829_v48 = vld [vmem:[%s4436_s1 + $0xc] ss:$40 sps:$4 sm:$0xff]  }
  0x2f   :  { %1823 = vmatpush1.bf16.msra.mxu0 %v2731_v49  ;;  %v2819_v49 = vld [vmem:[%s4439_s4 + $0x180] ss:$8 sps:$4 sm:$0xff]  }
  0x30   :  { %1726 = vmatpush2.bf16.msra.mxu1 %v2734_v50  ;;  %1824 = vmatprep.subr.bf16.mxu0 %v2740_v52  ;;  %v2822_v50 = vld [vmem:[%s4439_s4 + $0x200] ss:$8 sps:$4 sm:$0xff]   ;;  %v2836_v52 = vld [vmem:[%s4439_s4 + $0x374] ss:$8 sps:$4 sm:$0xff]  }
  0x31   :  { %1727 = vmatprep.subr.bf16.mxu1 %v2736_v51  ;;  %v2833_v51 = vld [vmem:[%s4439_s4 + $0x2f4] ss:$8 sps:$4 sm:$0xff]  }
  0x32   :  { %250 = vmatmul.mubr.bf16.gmra.mxu0 %v2735_v53  ;;  %v2827_v53 = vld [vmem:[%s4436_s1 + $0x8] ss:$40 sps:$4 sm:$0xff]  }
  0x33   :  { %1825 = vmatpush1.bf16.msra.mxu0 %v2738_v54  ;;  %259 = vmatprep.mubr.bf16.mxu0 %v3054_v2  ;;  %v2830_v54 = vld [vmem:[%s4436_s1 + $0x140] ss:$40 sps:$4 sm:$0xff]  }
  0x34   :  { %1728 = vmatpush2.bf16.msra.mxu1 %v2741_v55  ;;  %1826 = vmatprep.subr.bf16.mxu0 %v2746_v58  ;;  %v2831_v55 = vld [vmem:[%s4439_s4 + $0x2f0] ss:$8 sps:$4 sm:$0xff]   ;;  %v2842_v58 = vld [vmem:[%s4439_s4 + $0x364] ss:$8 sps:$4 sm:$0xff]  }
  0x35   :  { %1729 = vmatprep.subr.bf16.mxu1 %v2742_v57  ;;  %v2839_v57 = vld [vmem:[%s4439_s4 + $0x2e4] ss:$8 sps:$4 sm:$0xff]  }
  0x37   :  { %1827 = vmatpush1.bf16.msra.mxu0 %v2744_v59  ;;  %v2843_v59 = vld [vmem:[%s4436_s1 + $0x194] ss:$40 sps:$4 sm:$0xff]  }
  0x38   :  { %1730 = vmatpush2.bf16.msra.mxu1 %v2747_v60  ;;  %1828 = vmatprep.subr.bf16.mxu0 %v2753_v62  ;;  %v2845_v60 = vld [vmem:[%s4436_s1 + $0x5c] ss:$40 sps:$4 sm:$0xff]   ;;  %v2840_v62 = vld [vmem:[%s4439_s4 + $0x360] ss:$8 sps:$4 sm:$0xff]  }
  0x39   :  { %1731 = vmatprep.subr.bf16.mxu1 %v2749_v61  ;;  %v2837_v61 = vld [vmem:[%s4439_s4 + $0x2e0] ss:$8 sps:$4 sm:$0xff]  }
  0x3a   :  { %260 = vmatmul.mubr.bf16.gmra.mxu0 %v2748_v63  ;;  %v2851_v63 = vld [vmem:[%s4439_s4 + $0x2d4] ss:$8 sps:$4 sm:$0xff]  }
  0x3b   :  { %1829 = vmatpush1.bf16.msra.mxu0 %v2751_v0  ;;  %269 = vmatprep.mubr.bf16.mxu0 %v3054_v2  ;;  %v2854_v0 = vld [vmem:[%s4439_s4 + $0x354] ss:$8 sps:$4 sm:$0xff]  }
  0x3c   :  { %1732 = vmatpush2.bf16.msra.mxu1 %v2754_v1  ;;  %1830 = vmatprep.subr.bf16.mxu0 %v2759_v4  ;;  %v2847_v1 = vld [vmem:[%s4436_s1 + $0x190] ss:$40 sps:$4 sm:$0xff]  }
  0x3d   :  { %1733 = vmatprep.subr.bf16.mxu1 %v2755_v3  ;;  %v2848_v3 = vld [vmem:[%s4436_s1 + $0x58] ss:$40 sps:$4 sm:$0xff]  }
  0x3e   :  { %v2849_v4 = vld [vmem:[%s4439_s4 + $0x2d0] ss:$8 sps:$4 sm:$0xff]  }
  0x3f   :  { %1831 = vmatpush1.bf16.msra.mxu0 %v2757_v5  ;;  %v2852_v5 = vld [vmem:[%s4439_s4 + $0x350] ss:$8 sps:$4 sm:$0xff]  }
  0x40   :  { %1734 = vmatpush2.bf16.msra.mxu1 %v2760_v6  ;;  %1832 = vmatprep.subr.bf16.mxu0 %v2767_v8  ;;  %v2857_v6 = vld [vmem:[%s4439_s4 + $0x2c4] ss:$8 sps:$4 sm:$0xff]  }
  0x41   :  { %1929 = vmatprep.subr.bf16.mxu1 %v2770_v9  ;;  %v2861_v8 = vld [vmem:[%s4436_s1 + $0x1e4] ss:$40 sps:$4 sm:$0xff]  }
  0x42   :  { %270 = vmatmul.mubr.bf16.gmra.mxu0 %v2764_v10  ;;  %v2863_v9 = vld [vmem:[%s4436_s1 + $0xac] ss:$40 sps:$4 sm:$0xff]   ;;  %v2855_v10 = vld [vmem:[%s4439_s4 + $0x2c0] ss:$8 sps:$4 sm:$0xff]  }
  0x43   :  { %1736 = vmatmul.mubr.bf16.vlgmr.msra.gmra.mxu1 %v2761_v7  ;;  %1833 = vmatpush2.bf16.msra.mxu0 %v2765_v11  ;;  %v2860_v7 = vld [vmem:[%s4439_s4 + $0x344] ss:$8 sps:$4 sm:$0xff]   ;;  %v2858_v11 = vld [vmem:[%s4439_s4 + $0x340] ss:$8 sps:$4 sm:$0xff]  }
  0x44   :  { %1930 = vmatpush1.bf16.msra.mxu1 %v2768_v12  ;;  %1834 = vmatprep.subr.bf16.mxu0 %v2773_v13  ;;  %v2869_v12 = vld [vmem:[%s4439_s4 + $0x2b4] ss:$8 sps:$4 sm:$0xff]  }
  0x45   :  { %1931 = vmatprep.subr.bf16.mxu1 %v2776_v14  ;;  %279 = vmatprep.mubr.bf16.mxu0 %v3054_v2  ;;  %v2872_v13 = vld [vmem:[%s4439_s4 + $0x334] ss:$8 sps:$4 sm:$0xff]   ;;  %v2865_v14 = vld [vmem:[%s4436_s1 + $0x1e0] ss:$40 sps:$4 sm:$0xff]  }
  0x46   :  { %1745 = vmatprep.mubr.bf16.mxu1 %v2777_v15  ;;  %v2866_v15 = vld [vmem:[%s4436_s1 + $0xa8] ss:$40 sps:$4 sm:$0xff]  }
  0x47   :  { %1835 = vmatpush2.bf16.msra.mxu0 %v2771_v16  ;;  %v2867_v16 = vld [vmem:[%s4439_s4 + $0x2b0] ss:$8 sps:$4 sm:$0xff]  }
  0x48   :  { %1932 = vmatpush1.bf16.msra.mxu1 %v2774_v17  ;;  %1836 = vmatprep.subr.bf16.mxu0 %v2783_v19  ;;  %v2870_v17 = vld [vmem:[%s4439_s4 + $0x330] ss:$8 sps:$4 sm:$0xff]   ;;  %v2878_v19 = vld [vmem:[%s4439_s4 + $0x324] ss:$8 sps:$4 sm:$0xff]  }
  0x49   :  { %1933 = vmatprep.subr.bf16.mxu1 %v2786_v20  ;;  %v2879_v20 = vld [vmem:[%s4436_s1 + $0x234] ss:$40 sps:$4 sm:$0xff]  }
  0x4a   :  { %280 = vmatmul.mubr.bf16.gmra.mxu0 %v2779_v18  ;;  %v2875_v18 = vld [vmem:[%s4439_s4 + $0x2a4] ss:$8 sps:$4 sm:$0xff]  }
  0x4b   :  { %1746 = vmatmul.mubr.bf16.gmra.mxu1 %v2780_v21  ;;  %1837 = vmatpush2.bf16.msra.mxu0 %v2781_v22  ;;  %v2881_v21 = vld [vmem:[%s4436_s1 + $0xfc] ss:$40 sps:$4 sm:$0xff]   ;;  %v2873_v22 = vld [vmem:[%s4439_s4 + $0x2a0] ss:$8 sps:$4 sm:$0xff]  }
  0x4c   :  { %1934 = vmatpush1.bf16.msra.mxu1 %v2784_v23  ;;  %1838 = vmatprep.subr.bf16.mxu0 %v2789_v24  ;;  %v2876_v23 = vld [vmem:[%s4439_s4 + $0x320] ss:$8 sps:$4 sm:$0xff]   ;;  %v2887_v24 = vld [vmem:[%s4439_s4 + $0x294] ss:$8 sps:$4 sm:$0xff]  }
  0x4d   :  { %1935 = vmatprep.subr.bf16.mxu1 %v2792_v25  ;;  %289 = vmatprep.mubr.bf16.mxu0 %v3054_v2  ;;  %v2890_v25 = vld [vmem:[%s4439_s4 + $0x314] ss:$8 sps:$4 sm:$0xff]  }
  0x4e   :  { %1755 = vmatprep.mubr.bf16.mxu1 %v2793_v26  ;;  %v2883_v26 = vld [vmem:[%s4436_s1 + $0x230] ss:$40 sps:$4 sm:$0xff]  }
  0x4f   :  { %1839 = vmatpush2.bf16.msra.mxu0 %v2787_v27  ;;  %v2884_v27 = vld [vmem:[%s4436_s1 + $0xf8] ss:$40 sps:$4 sm:$0xff]  }
  0x50   :  { %1936 = vmatpush1.bf16.msra.mxu1 %v2790_v28  ;;  %1840 = vmatprep.subr.bf16.mxu0 %v2799_v29  ;;  %v2885_v28 = vld [vmem:[%s4439_s4 + $0x290] ss:$8 sps:$4 sm:$0xff]  }
  0x51   :  { %1937 = vmatprep.subr.bf16.mxu1 %v2802_v30  ;;  %v2888_v29 = vld [vmem:[%s4439_s4 + $0x310] ss:$8 sps:$4 sm:$0xff]   ;;  %v2893_v30 = vld [vmem:[%s4439_s4 + $0x284] ss:$8 sps:$4 sm:$0xff]  }
  0x52   :  { %290 = vmatmul.mubr.bf16.gmra.mxu0 %v2795_v31  ;;  %v2896_v31 = vld [vmem:[%s4439_s4 + $0x304] ss:$8 sps:$4 sm:$0xff]  }
  0x53   :  { %1756 = vmatmul.mubr.bf16.gmra.mxu1 %v2796_v32  ;;  %1841 = vmatpush2.bf16.msra.mxu0 %v2797_v33  ;;  %v2897_v32 = vld [vmem:[%s4436_s1 + $0x14c] ss:$40 sps:$4 sm:$0xff]  }
  0x54   :  { %1938 = vmatpush1.bf16.msra.mxu1 %v2800_v34  ;;  %1842 = vmatprep.subr.bf16.mxu0 %v2805_v35  ;;  %v2901_v33 = vld [vmem:[%s4436_s1 + $0x14] ss:$40 sps:$4 sm:$0xff]   ;;  %v2891_v34 = vld [vmem:[%s4439_s4 + $0x280] ss:$8 sps:$4 sm:$0xff]  }
  0x55   :  { %1939 = vmatprep.subr.bf16.mxu1 %v2808_v36  ;;  %299 = vmatprep.mubr.bf16.mxu0 %v3054_v2  ;;  %v2821_v2 = vld [vmem:[%s4439_s4 + $0x184] ss:$8 sps:$4 sm:$0xff]   ;;  %v2894_v35 = vld [vmem:[%s4439_s4 + $0x300] ss:$8 sps:$4 sm:$0xff]   ;;  %v2905_v36 = vld [vmem:[%s4439_s4 + $0x3f4] ss:$8 sps:$4 sm:$0xff]  }
  0x56   :  { %1765 = vmatprep.mubr.bf16.mxu1 %v2809_v37  ;;  %v3594_v37 = vld [vmem:[%s4439_s4 + $0x474] ss:$8 sps:$4 sm:$0xff]  }
  0x57   :  { %1843 = vmatpush2.bf16.msra.mxu0 %v2803_v38  ;;  %v2899_v38 = vld [vmem:[%s4436_s1 + $0x10] ss:$40 sps:$4 sm:$0xff]  }
  0x58   :  { %1940 = vmatpush1.bf16.msra.mxu1 %v2806_v39  ;;  %1844 = vmatprep.subr.bf16.mxu0 %v2815_v40  ;;  %v2902_v39 = vld [vmem:[%s4436_s1 + $0x148] ss:$40 sps:$4 sm:$0xff]  }
  0x59   :  { %1941 = vmatprep.subr.bf16.mxu1 %v2818_v41  ;;  %v2903_v40 = vld [vmem:[%s4439_s4 + $0x3f0] ss:$8 sps:$4 sm:$0xff]  }
  0x5a   :  { %300 = vmatmul.mubr.bf16.gmra.mxu0 %v2811_v42  ;;  %v3608_v41 = vld [vmem:[%s4439_s4 + $0x470] ss:$8 sps:$4 sm:$0xff]   ;;  %v2911_v42 = vld [vmem:[%s4439_s4 + $0x3e4] ss:$8 sps:$4 sm:$0xff]  }
  0x5b   :  { %1766 = vmatmul.mubr.bf16.gmra.mxu1 %v2812_v43  ;;  %1845 = vmatpush2.bf16.msra.mxu0 %v2813_v44  ;;  %v2912_v43 = vld [vmem:[%s4436_s1 + $0x19c] ss:$40 sps:$4 sm:$0xff]  }
  0x5c   :  { %1942 = vmatpush1.bf16.msra.mxu1 %v2816_v45  ;;  %1846 = vmatprep.subr.bf16.mxu0 %v2821_v2  ;;  %v2914_v44 = vld [vmem:[%s4436_s1 + $0x64] ss:$40 sps:$4 sm:$0xff]   ;;  %v2909_v2 = vld [vmem:[%s4439_s4 + $0x3e0] ss:$8 sps:$4 sm:$0xff]  }
  0x5d   :  { %1943 = vmatprep.subr.bf16.mxu1 %v2824_v46  ;;  %1775 = vmatprep.mubr.bf16.mxu1 %v2825_v47  ;;  %v3623_v45 = vld [vmem:[%s4439_s4 + $0x464] ss:$8 sps:$4 sm:$0xff]   ;;  %v2920_v46 = vld [vmem:[%s4439_s4 + $0x3d4] ss:$8 sps:$4 sm:$0xff]   ;;  %v3635_v47 = vld [vmem:[%s4439_s4 + $0x460] ss:$8 sps:$4 sm:$0xff]  }
  0x5e   :  { %1848 = vmatprep.mubr.bf16.mxu0 %v2829_v48  ;;  %v3640_v48 = vld [vmem:[%s4439_s4 + $0x454] ss:$8 sps:$4 sm:$0xff]  }
  0x5f   :  { %1847 = vmatpush2.bf16.msra.mxu0 %v2819_v49  ;;  %v2916_v49 = vld [vmem:[%s4436_s1 + $0x198] ss:$40 sps:$4 sm:$0xff]  }
  0x60   :  { %1944 = vmatpush1.bf16.msra.mxu1 %v2822_v50  ;;  %2042 = vmatprep.subr.bf16.mxu0 %v2836_v52  ;;  %v2917_v50 = vld [vmem:[%s4436_s1 + $0x60] ss:$40 sps:$4 sm:$0xff]   ;;  %v2926_v52 = vld [vmem:[%s4439_s4 + $0x3c4] ss:$8 sps:$4 sm:$0xff]  }
  0x61   :  { %1945 = vmatprep.subr.bf16.mxu1 %v2833_v51  ;;  %v2918_v51 = vld [vmem:[%s4439_s4 + $0x3d0] ss:$8 sps:$4 sm:$0xff]  }
  0x62   :  { %1849 = vmatmul.mubr.bf16.vlgmr.msra.gmra.mxu0 %v2827_v53  ;;  %v2927_v53 = vld [vmem:[%s4436_s1 + $0x1ec] ss:$40 sps:$4 sm:$0xff]  }
  0x63   :  { %1776 = vmatmul.mubr.bf16.gmra.mxu1 %v2830_v54  ;;  %2043 = vmatpush1.bf16.msra.mxu0 %v2834_v56  ;;  %v2929_v54 = vld [vmem:[%s4436_s1 + $0xb4] ss:$40 sps:$4 sm:$0xff]   ;;  %v3671_v56 = vld [vmem:[%s4439_s4 + $0x444] ss:$8 sps:$4 sm:$0xff]  }
  0x64   :  { %1946 = vmatpush2.bf16.msra.mxu1 %v2831_v55  ;;  %2044 = vmatprep.subr.bf16.mxu0 %v2842_v58  ;;  %v3666_v55 = vld [vmem:[%s4439_s4 + $0x450] ss:$8 sps:$4 sm:$0xff]  }
  0x65   :  { %1947 = vmatprep.subr.bf16.mxu1 %v2839_v57  ;;  %1785 = vmatprep.mubr.bf16.mxu1 %v2843_v59  ;;  %v2924_v57 = vld [vmem:[%s4439_s4 + $0x3c0] ss:$8 sps:$4 sm:$0xff]   ;;  %v2938_v59 = vld [vmem:[%s4439_s4 + $0x3b4] ss:$8 sps:$4 sm:$0xff]  }
  0x66   :  { %1858 = vmatprep.mubr.bf16.mxu0 %v2845_v60  ;;  %v2934_v58 = vld [vmem:[%s4436_s1 + $0x1e8] ss:$40 sps:$4 sm:$0xff]  }
  0x67   :  { %2045 = vmatpush1.bf16.msra.mxu0 %v2840_v62  ;;  %v3686_v60 = vld [vmem:[%s4439_s4 + $0x440] ss:$8 sps:$4 sm:$0xff]   ;;  %v2936_v62 = vld [vmem:[%s4439_s4 + $0x3b0] ss:$8 sps:$4 sm:$0xff]  }
  0x68   :  { %1948 = vmatpush2.bf16.msra.mxu1 %v2837_v61  ;;  %2046 = vmatprep.subr.bf16.mxu0 %v2854_v0  ;;  %v2935_v61 = vld [vmem:[%s4436_s1 + $0xb0] ss:$40 sps:$4 sm:$0xff]   ;;  %v2945_v0 = vld [vmem:[%s4436_s1 + $0x23c] ss:$40 sps:$4 sm:$0xff]  }
  0x69   :  { %1949 = vmatprep.subr.bf16.mxu1 %v2851_v63  ;;  %v2941_v63 = vld [vmem:[%s4439_s4 + $0x3a4] ss:$8 sps:$4 sm:$0xff]  }
  0x6a   :  { %1859 = vmatmul.mubr.bf16.gmra.mxu0 %v2848_v3  ;;  %v3708_v3 = vld [vmem:[%s4439_s4 + $0x434] ss:$8 sps:$4 sm:$0xff]  }
  0x6b   :  { %1786 = vmatmul.mubr.bf16.gmra.mxu1 %v2847_v1  ;;  %2047 = vmatpush1.bf16.msra.mxu0 %v2852_v5  ;;  %v2947_v1 = vld [vmem:[%s4436_s1 + $0x104] ss:$40 sps:$4 sm:$0xff]   ;;  %v3716_v5 = vld [vmem:[%s4439_s4 + $0x430] ss:$8 sps:$4 sm:$0xff]  }
  0x6c   :  { %1950 = vmatpush2.bf16.msra.mxu1 %v2849_v4  ;;  %2048 = vmatprep.subr.bf16.mxu0 %v2860_v7  ;;  %v2939_v4 = vld [vmem:[%s4439_s4 + $0x3a0] ss:$8 sps:$4 sm:$0xff]   ;;  %v2953_v7 = vld [vmem:[%s4439_s4 + $0x394] ss:$8 sps:$4 sm:$0xff]  }
  0x6d   :  { %1951 = vmatprep.subr.bf16.mxu1 %v2857_v6  ;;  %1795 = vmatprep.mubr.bf16.mxu1 %v2861_v8  ;;  %v3721_v6 = vld [vmem:[%s4439_s4 + $0x424] ss:$8 sps:$4 sm:$0xff]   ;;  %v2949_v8 = vld [vmem:[%s4436_s1 + $0x238] ss:$40 sps:$4 sm:$0xff]  }
  0x6e   :  { %1868 = vmatprep.mubr.bf16.mxu0 %v2863_v9  ;;  %v2950_v9 = vld [vmem:[%s4436_s1 + $0x100] ss:$40 sps:$4 sm:$0xff]  }
  0x6f   :  { %2049 = vmatpush1.bf16.msra.mxu0 %v2858_v11  ;;  %v2956_v11 = vld [vmem:[%s4439_s4 + $0x384] ss:$8 sps:$4 sm:$0xff]  }
  0x70   :  { %1952 = vmatpush2.bf16.msra.mxu1 %v2855_v10  ;;  %2050 = vmatprep.subr.bf16.mxu0 %v2872_v13  ;;  %v2951_v10 = vld [vmem:[%s4439_s4 + $0x390] ss:$8 sps:$4 sm:$0xff]   ;;  %v2964_v13 = vld [vmem:[%s4436_s1 + $0x1c] ss:$40 sps:$4 sm:$0xff]  }
  0x71   :  { %1953 = vmatprep.subr.bf16.mxu1 %v2869_v12  ;;  %v2960_v12 = vld [vmem:[%s4436_s1 + $0x154] ss:$40 sps:$4 sm:$0xff]  }
  0x72   :  { %1869 = vmatmul.mubr.bf16.gmra.mxu0 %v2866_v15  ;;  %v3755_v15 = vld [vmem:[%s4439_s4 + $0x414] ss:$8 sps:$4 sm:$0xff]  }
  0x73   :  { %1796 = vmatmul.mubr.bf16.gmra.mxu1 %v2865_v14  ;;  %2051 = vmatpush1.bf16.msra.mxu0 %v2870_v17  ;;  %v3750_v14 = vld [vmem:[%s4439_s4 + $0x420] ss:$8 sps:$4 sm:$0xff]  }
  0x74   :  { %1954 = vmatpush2.bf16.msra.mxu1 %v2867_v16  ;;  %2052 = vmatprep.subr.bf16.mxu0 %v2878_v19  ;;  %v2954_v16 = vld [vmem:[%s4439_s4 + $0x380] ss:$8 sps:$4 sm:$0xff]   ;;  %v3055_v19 = vmov 65535  }
  0x75   :  { %1955 = vmatprep.subr.bf16.mxu1 %v2875_v18  ;;  %1805 = vmatprep.mubr.bf16.mxu1 %v2879_v20  ;;  %v2962_v17 = vld [vmem:[%s4436_s1 + $0x18] ss:$40 sps:$4 sm:$0xff]   ;;  %v1695_v20 = vsel %vm1693_vm0, 4294967295, %v3055_v19 }
  0x76   :  { %1878 = vmatprep.mubr.bf16.mxu0 %v2881_v21  ;;  %v3767_v18 = vld [vmem:[%s4439_s4 + $0x410] ss:$8 sps:$4 sm:$0xff]  }
  0x77   :  { %2053 = vmatpush1.bf16.msra.mxu0 %v2876_v23  ;;  %v2965_v21 = vld [vmem:[%s4436_s1 + $0x150] ss:$40 sps:$4 sm:$0xff]   ;;  %v2995_v23 = vld [vmem:[%s4439_s4 + $0x484] ss:$8 sps:$4 sm:$0x1f]  }
  0x78   :  { %1956 = vmatpush2.bf16.msra.mxu1 %v2873_v22  ;;  %2054 = vmatprep.subr.bf16.mxu0 %v2890_v25  ;;  %v2969_v22 = vld [vmem:[%s4436_s1 + $0x1a4] ss:$40 sps:$4 sm:$0xff]   ;;  %v1696_v25 = vsel %vm1694_vm1, %v1695_v20, 0 }
  0x79   :  { %1957 = vmatprep.subr.bf16.mxu1 %v2887_v24  ;;  %v2971_v24 = vld [vmem:[%s4436_s1 + $0x6c] ss:$40 sps:$4 sm:$0xff]  }
  0x7a   :  { %1879 = vmatmul.mubr.bf16.gmra.mxu0 %v2884_v27  ;;  %v2984_v27 = vld [vmem:[%s4439_s4 + $0x400] ss:$8 sps:$4 sm:$0xff]  }
  0x7b   :  { %1806 = vmatmul.mubr.bf16.gmra.mxu1 %v2883_v26  ;;  %2055 = vmatpush1.bf16.msra.mxu0 %v2888_v29  ;;  %v2986_v26 = vld [vmem:[%s4439_s4 + $0x404] ss:$8 sps:$4 sm:$0xff]   ;;  %v2993_v29 = vld [vmem:[%s4439_s4 + $0x480] ss:$8 sps:$4 sm:$0x1f]  }
  0x7c   :  { %1958 = vmatpush2.bf16.msra.mxu1 %v2885_v28  ;;  %2056 = vmatprep.subr.bf16.mxu0 %v2896_v31  ;;  %v1701_v28 = vand.u32 %v2995_v23, %v1696_v25  ;;  %v2974_v31 = vld [vmem:[%s4436_s1 + $0x68] ss:$40 sps:$4 sm:$0xff]  }
  0x7d   :  { %1959 = vmatprep.subr.bf16.mxu1 %v2893_v30  ;;  %1888 = vmatprep.mubr.bf16.mxu0 %v2897_v32  ;;  %v2973_v30 = vld [vmem:[%s4436_s1 + $0x1a0] ss:$40 sps:$4 sm:$0xff]   ;;  %v2978_v32 = vld [vmem:[%s4436_s1 + $0x1f4] ss:$40 sps:$4 sm:$0xff]  }
  0x7e   :  { %1961 = vmatprep.mubr.bf16.mxu1 %v2901_v33  ;;  %v2980_v33 = vld [vmem:[%s4436_s1 + $0xbc] ss:$40 sps:$4 sm:$0xff]  }
  0x7f   :  { %2057 = vmatpush1.bf16.msra.mxu0 %v2894_v35 }
  0x80   :  { %1960 = vmatpush2.bf16.msra.mxu1 %v2891_v34  ;;  %2058 = vmatprep.subr.bf16.mxu0 %v2905_v36  ;;  %v1698_v34 = vand.u32 %v2993_v29, %v1696_v25 }
  0x81   :  { %2638 = vmatprep.subr.bf16.mxu1 %v3594_v37 }
  0x82   :  { %1889 = vmatmul.mubr.bf16.gmra.mxu0 %v2902_v39 }
  0x83   :  { %1962 = vmatmul.mubr.bf16.vlgmr.msra.gmra.mxu1 %v2899_v38  ;;  %2059 = vmatpush2.bf16.msra.mxu0 %v2903_v40 }
  0x84   :  { %2647 = vmatpush1.bf16.msra.mxu1 %v3608_v41  ;;  %2060 = vmatprep.subr.bf16.mxu0 %v2911_v42 }
  0x85   :  { %1898 = vmatprep.mubr.bf16.mxu0 %v2912_v43  ;;  %1971 = vmatprep.mubr.bf16.mxu1 %v2914_v44 }
  0x86   :  { %2639 = vmatprep.subr.bf16.mxu1 %v3623_v45 }
  0x87   :  { %2061 = vmatpush2.bf16.msra.mxu0 %v2909_v2 }
  0x88   :  { %2648 = vmatpush1.bf16.msra.mxu1 %v3635_v47  ;;  %2062 = vmatprep.subr.bf16.mxu0 %v2920_v46 }
  0x89   :  { %2640 = vmatprep.subr.bf16.mxu1 %v3640_v48 }
  0x8a   :  { %1899 = vmatmul.mubr.bf16.gmra.mxu0 %v2916_v49 }
  0x8b   :  { %1972 = vmatmul.mubr.bf16.gmra.mxu1 %v2917_v50  ;;  %2063 = vmatpush2.bf16.msra.mxu0 %v2918_v51 }
  0x8c   :  { %1908 = vmatprep.mubr.bf16.mxu0 %v2927_v53  ;;  %2064 = vmatprep.subr.bf16.mxu0 %v2926_v52 }
  0x8d   :  { %1981 = vmatprep.mubr.bf16.mxu1 %v2929_v54  ;;  %2649 = vmatpush1.bf16.msra.mxu1 %v3666_v55 }
  0x8e   :  { %2641 = vmatprep.subr.bf16.mxu1 %v3671_v56 }
  0x8f   :  { %2065 = vmatpush2.bf16.msra.mxu0 %v2924_v57 }
  0x90   :  { %2066 = vmatprep.subr.bf16.mxu0 %v2938_v59 }
  0x91   :  { %2650 = vmatpush1.bf16.msra.mxu1 %v3686_v60 }
  0x92   :  { %1909 = vmatmul.mubr.bf16.gmra.mxu0 %v2934_v58  ;;  %2642 = vmatprep.subr.bf16.mxu1 %v3708_v3 }
  0x93   :  { %1982 = vmatmul.mubr.bf16.gmra.mxu1 %v2935_v61  ;;  %2067 = vmatpush2.bf16.msra.mxu0 %v2936_v62 }
  0x94   :  { %1918 = vmatprep.mubr.bf16.mxu0 %v2945_v0  ;;  %2068 = vmatprep.subr.bf16.mxu0 %v2941_v63 }
  0x95   :  { %1991 = vmatprep.mubr.bf16.mxu1 %v2947_v1  ;;  %2651 = vmatpush1.bf16.msra.mxu1 %v3716_v5 }
  0x96   :  { %2643 = vmatprep.subr.bf16.mxu1 %v3721_v6 }
  0x97   :  { %2069 = vmatpush2.bf16.msra.mxu0 %v2939_v4 }
  0x98   :  { %2070 = vmatprep.subr.bf16.mxu0 %v2953_v7 }
  0x99   :  { %2652 = vmatpush1.bf16.msra.mxu1 %v3750_v14 }
  0x9a   :  { %1919 = vmatmul.mubr.bf16.gmra.mxu0 %v2949_v8  ;;  %2644 = vmatprep.subr.bf16.mxu1 %v3755_v15 }
  0x9b   :  { %1992 = vmatmul.mubr.bf16.gmra.mxu1 %v2950_v9  ;;  %2071 = vmatpush2.bf16.msra.mxu0 %v2951_v10 }
  0x9c   :  { %2001 = vmatprep.mubr.bf16.mxu1 %v2960_v12  ;;  %2072 = vmatprep.subr.bf16.mxu0 %v2956_v11 }
  0x9d   :  { %2074 = vmatprep.mubr.bf16.mxu0 %v2964_v13  ;;  %2653 = vmatpush1.bf16.msra.mxu1 %v3767_v18 }
  0x9e   :  { %2645 = vmatprep.subr.bf16.mxu1 %v2986_v26 }
  0x9f   :  { %2073 = vmatpush2.bf16.msra.mxu0 %v2954_v16 }
  0xa0   :  { %2155 = vmatprep.subr.bf16.mxu0 %v3594_v37 }
  0xa1   :  { %2654 = vmatpush1.bf16.msra.mxu1 %v2984_v27 }
  0xa2   :  { %2075 = vmatmul.mubr.bf16.vlgmr.msra.gmra.mxu0 %v2962_v17  ;;  %2646 = vmatprep.subr.bf16.mxu1 %v1701_v28 }
  0xa3   :  { %2002 = vmatmul.mubr.bf16.gmra.mxu1 %v2965_v21  ;;  %2156 = vmatpush1.bf16.msra.mxu0 %v3608_v41 }
  0xa4   :  { %2011 = vmatprep.mubr.bf16.mxu1 %v2969_v22  ;;  %2084 = vmatprep.mubr.bf16.mxu0 %v2971_v24 }
  0xa5   :  { %2157 = vmatprep.subr.bf16.mxu0 %v3623_v45 }
  0xa7   :  { %2158 = vmatpush1.bf16.msra.mxu0 %v3635_v47 }
  0xa8   :  { %2159 = vmatprep.subr.bf16.mxu0 %v3640_v48 }
  0xa9   :  { %11 = vsyncpa [#allocation3], 0  ;;  %2655 = vmatpush2.bf16.msra.mxu1 %v1698_v34  ;;  %v2982_v35 = vld [vmem:[%s4436_s1 + $0x1f0] ss:$40 sps:$4 sm:$0xff]   ;;  %v2987_v37 = vld [vmem:[%s4436_s1 + $0x244] ss:$40 sps:$4 sm:$0xff]  }
  0xaa   :  { %2085 = vmatmul.mubr.bf16.gmra.mxu0 %v2974_v31  ;;  %v2983_v36 = vld [vmem:[%s4436_s1 + $0xb8] ss:$40 sps:$4 sm:$0xff]   ;;  %v2989_v38 = vld [vmem:[%s4436_s1 + $0x10c] ss:$40 sps:$4 sm:$0xff]   ;;  %v2992_v40 = vld [vmem:[%s4436_s1 + $0x108] ss:$40 sps:$4 sm:$0xff]  }
  0xab   :  { %2012 = vmatmul.mubr.bf16.gmra.mxu1 %v2973_v30  ;;  %2094 = vmatprep.mubr.bf16.mxu0 %v2980_v33  ;;  %v2991_v39 = vld [vmem:[%s4436_s1 + $0x240] ss:$40 sps:$4 sm:$0xff]   ;;  %v2996_v41 = vld [vmem:[%s4436_s1 + $0x15c] ss:$40 sps:$4 sm:$0xff]   ;;  %vm1668_vm2 = vcmask 72704  }
  0xac   :  { %2021 = vmatprep.mubr.bf16.mxu1 %v2978_v32  ;;  %2160 = vmatpush1.bf16.msra.mxu0 %v3666_v55  ;;  %v3000_v42 = vld [vmem:[%s4436_s1 + $0xc4] ss:$40 sps:$4 sm:$0xff]   ;;  %v2998_v43 = vld [vmem:[%s4436_s1 + $0xc0] ss:$40 sps:$4 sm:$0xff]   ;;  %v3004_v2 = vld [vmem:[%s4436_s1 + $0x114] ss:$40 sps:$4 sm:$0xff]  }
  0xad   :  { %2161 = vmatprep.subr.bf16.mxu0 %v3671_v56  ;;  %v3001_v44 = vld [vmem:[%s4436_s1 + $0x158] ss:$40 sps:$4 sm:$0xff]   ;;  %v3002_v45 = vld [vmem:[%s4436_s1 + $0x1ac] ss:$40 sps:$4 sm:$0xff]   ;;  %v3006_v46 = vld [vmem:[%s4436_s1 + $0x1a8] ss:$40 sps:$4 sm:$0xff]  }
  0xae   :  { %v3007_v47 = vld [vmem:[%s4436_s1 + $0x110] ss:$40 sps:$4 sm:$0xff]   ;;  %v3008_v48 = vld [vmem:[%s4436_s1 + $0x1fc] ss:$40 sps:$4 sm:$0xff]   ;;  %v3013_v51 = vld [vmem:[%s4436_s1 + $0x160] ss:$40 sps:$4 sm:$0xff]  }
  0xaf   :  { %v3010_v49 = vld [vmem:[%s4436_s1 + $0x164] ss:$40 sps:$4 sm:$0xff]   ;;  %v3012_v50 = vld [vmem:[%s4436_s1 + $0x1f8] ss:$40 sps:$4 sm:$0xff]   ;;  %v3016_v53 = vld [vmem:[%s4436_s1 + $0x1b4] ss:$40 sps:$4 sm:$0xff]  }
  0xb0   :  { %2162 = vmatpush1.bf16.msra.mxu0 %v3686_v60  ;;  %v3014_v52 = vld [vmem:[%s4436_s1 + $0x24c] ss:$40 sps:$4 sm:$0xff]   ;;  %v3018_v54 = vld [vmem:[%s4436_s1 + $0x248] ss:$40 sps:$4 sm:$0xff]  }
  0xb1   :  { %2163 = vmatprep.subr.bf16.mxu0 %v3708_v3  ;;  %v3019_v55 = vld [vmem:[%s4436_s1 + $0x1b0] ss:$40 sps:$4 sm:$0xff]   ;;  %v3022_v56 = vld [vmem:[%s4436_s1 + $0x24] ss:$40 sps:$4 sm:$0xff]   ;;  %v3020_v58 = vld [vmem:[%s4436_s1 + $0x20] ss:$40 sps:$4 sm:$0xff]  }
  0xb2   :  { %2095 = vmatmul.mubr.bf16.gmra.mxu0 %v2983_v36  ;;  %v3023_v57 = vld [vmem:[%s4436_s1 + $0x204] ss:$40 sps:$4 sm:$0xff]   ;;  %v3025_v59 = vld [vmem:[%s4436_s1 + $0x200] ss:$40 sps:$4 sm:$0xff]   ;;  %v3026_v60 = vld [vmem:[%s4436_s1 + $0x74] ss:$40 sps:$4 sm:$0xff]  }
  0xb3   :  { %2022 = vmatmul.mubr.bf16.gmra.mxu1 %v2982_v35  ;;  %2104 = vmatprep.mubr.bf16.mxu0 %v2989_v38  ;;  %v3028_v61 = vld [vmem:[%s4436_s1 + $0x254] ss:$40 sps:$4 sm:$0xff]   ;;  %v3030_v1 = vld [vmem:[%s4436_s1 + $0x70] ss:$40 sps:$4 sm:$0xff]   ;;  %v59_v35 = vlaneseq }
  0xb4   :  { %2031 = vmatprep.mubr.bf16.mxu1 %v2987_v37  ;;  %2164 = vmatpush1.bf16.msra.mxu0 %v3716_v5  ;;  %v3031_v3 = vld [vmem:[%s4436_s1 + $0x250] ss:$40 sps:$4 sm:$0xff]  }
  0xb5   :  { %2165 = vmatprep.subr.bf16.mxu0 %v3721_v6 }
  0xb8   :  { %2166 = vmatpush1.bf16.msra.mxu0 %v3750_v14 }
  0xb9   :  { %2167 = vmatprep.subr.bf16.mxu0 %v3755_v15 }
  0xba   :  { %2105 = vmatmul.mubr.bf16.gmra.mxu0 %v2992_v40  ;;  %v3970_v40 = vshrl.u32 %v59_v35, 7 }
  0xbb   :  { %2032 = vmatmul.mubr.bf16.gmra.mxu1 %v2991_v39  ;;  %2114 = vmatprep.mubr.bf16.mxu0 %v2996_v41 }
  0xbc   :  { %2632 = vmatprep.mubr.msk.bf16.mxu1 %vm1668_vm2, %v3000_v42  ;;  %2168 = vmatpush1.bf16.msra.mxu0 %v3767_v18 }
  0xbd   :  { %2169 = vmatprep.subr.bf16.mxu0 %v2986_v26 }
  0xc0   :  { %2170 = vmatpush1.bf16.msra.mxu0 %v2984_v27 }
  0xc1   :  { %2185 = vmatprep.subr.bf16.mxu0 %v1701_v28 }
  0xc2   :  { %2115 = vmatmul.mubr.bf16.gmra.mxu0 %v3001_v44 }
  0xc3   :  { %2208 = vmatmul.mubr.bf16.vlgmr.msra.gmra.mxu1 %v2998_v43  ;;  %2124 = vmatprep.mubr.bf16.mxu0 %v3002_v45  ;;  %v536_v43 = vld [vmem:[%s4440_s5] sm:$0x3] }
  0xc4   :  { %2633 = vmatprep.mubr.msk.bf16.mxu1 %vm1668_vm2, %v3004_v2  ;;  %2186 = vmatpush2.bf16.msra.mxu0 %v1698_v34  ;;  %v4443_v2 = vsub.s32 0, %v3970_v40 }
  0xca   :  { %2125 = vmatmul.mubr.bf16.gmra.mxu0 %v3006_v46 }
  0xcb   :  { %2218 = vmatmul.mubr.bf16.gmra.mxu1 %v3007_v47  ;;  %2134 = vmatprep.mubr.bf16.mxu0 %v3008_v48  ;;  %v4442_v48 = vsub.s32 1, %v3970_v40 }
  0xcc   :  { %2634 = vmatprep.mubr.msk.bf16.mxu1 %vm1668_vm2, %v3010_v49  ;;  %v3985_v49 = vrot.slane %v536_v43, %v4443_v2 }
  0xd2   :  { %2135 = vmatmul.mubr.bf16.gmra.mxu0 %v3012_v50 }
  0xd3   :  { %2228 = vmatmul.mubr.bf16.gmra.mxu1 %v3013_v51  ;;  %2144 = vmatprep.mubr.bf16.mxu0 %v3014_v52  ;;  %v3991_v52 = vrot.slane %v536_v43, %v4442_v48 }
  0xd4   :  { %2635 = vmatprep.mubr.msk.bf16.mxu1 %vm1668_vm2, %v3016_v53 }
  0xda   :  { %2145 = vmatmul.mubr.bf16.gmra.mxu0 %v3018_v54 }
  0xdb   :  { %2238 = vmatmul.mubr.bf16.gmra.mxu1 %v3019_v55  ;;  %2630 = vmatprep.mubr.msk.bf16.mxu0 %vm1668_vm2, %v3022_v56 }
  0xdc   :  { %2636 = vmatprep.mubr.msk.bf16.mxu1 %vm1668_vm2, %v3023_v57 }
  0xe2   :  { %v3908_v62 = vpop.f32.mrf.mxu0  ;;  %2188 = vmatmul.mubr.bf16.vlgmr.msra.gmra.mxu0 %v3020_v58 }
  0xe3   :  { %2248 = vmatmul.mubr.bf16.gmra.mxu1 %v3025_v59  ;;  %2631 = vmatprep.mubr.msk.bf16.mxu0 %vm1668_vm2, %v3026_v60 }
  0xe4   :  { %2637 = vmatprep.mubr.msk.bf16.mxu1 %vm1668_vm2, %v3028_v61  ;;  %v3912_v63 = vpop.f32.mrf.mxu0 }
  0xe6   :  { %v3914_v0 = vpop.f32.mrf.mxu0 }
  0xe8   :  { %v3922_v4 = vpop.f32.mrf.mxu0 }
  0xea   :  { %v3924_v5 = vpop.f32.mrf.mxu0  ;;  %2198 = vmatmul.mubr.bf16.gmra.mxu0 %v3030_v1 }
  0xeb   :  { %2258 = vmatmul.mubr.bf16.gmra.mxu1 %v3031_v3 }
  0xec   :  { %v3926_v6 = vpop.f32.mrf.mxu0 }
  0xed   :  { %4444 = vst [vmem:[#allocation5_spill] sm:$0xff] %v3926_v6 }
  0xee   :  { %v3928_v7 = vpop.f32.mrf.mxu0 }
  0xef   :  { %4445 = vst [vmem:[#allocation6_spill] sm:$0xff] %v3928_v7  ;;  %v4499_v7 = vsub.s32 1, %v3970_v40 }
  0xf0   :  { %v3930_v8 = vpop.f32.mrf.mxu0 }
  0xf1   :  { %4446 = vst [vmem:[#allocation7_spill] sm:$0xff] %v3930_v8 }
  0xf2   :  { %v3932_v9 = vpop.f32.mrf.mxu0 }
  0xf4   :  { %v3934_v10 = vpop.f32.mrf.mxu0 }
  0xf6   :  { %v3936_v11 = vpop.f32.mrf.mxu0 }
  0xf8   :  { %v3938_v12 = vpop.f32.mrf.mxu0 }
  0xfa   :  { %v3940_v13 = vpop.f32.mrf.mxu0 }
  0xfc   :  { %v3942_v14 = vpop.f32.mrf.mxu0 }
  0xfe   :  { %v3944_v15 = vpop.f32.mrf.mxu0 }
 0x100   :  { %v3946_v16 = vpop.f32.mrf.mxu0 }
 0x102   :  { %v3948_v17 = vpop.f32.mrf.mxu0 }
 0x103   :  { %v1737_v18 = vpop.f32.mrf.mxu1 }
 0x104   :  { %v3950_v19 = vpop.f32.mrf.mxu0  ;;  %v1738_v55 = vadd.f32 %v1737_v18, %v3985_v49 }
 0x105   :  { %v1739_v20 = vpop.f32.mrf.mxu1 }
 0x106   :  { %v3952_v21 = vpop.f32.mrf.mxu0  ;;  %v1740_v58 = vadd.f32 %v1739_v20, %v3991_v52 }
 0x107   :  { %4447 = vst [vmem:[#allocation8_spill] sm:$0xff] %v3952_v21  ;;  %v1741_v22 = vpop.f32.mrf.mxu1 }
 0x108   :  { %v3954_v23 = vpop.f32.mrf.mxu0  ;;  %v1742_v1 = vadd.f32 %v1741_v22, %v3985_v49 }
 0x109   :  { %4448 = vst [vmem:[#allocation9_spill] sm:$0xff] %v3954_v23  ;;  %v1743_v24 = vpop.f32.mrf.mxu1 }
 0x10a   :  { %v3956_v25 = vpop.f32.mrf.mxu0  ;;  %v1744_v48 = vadd.f32 %v1743_v24, %v3991_v52 }
 0x10b   :  { %4449 = vst [vmem:[#allocation10_spill] sm:$0xff] %v3956_v25  ;;  %v1747_v26 = vpop.f32.mrf.mxu1 }
 0x10c   :  { %v3958_v27 = vpop.f32.mrf.mxu0  ;;  %v1748_v20 = vadd.f32 %v1747_v26, %v3985_v49 }
 0x10d   :  { %4450 = vst [vmem:[#allocation11_spill] sm:$0xff] %v3958_v27  ;;  %v1749_v28 = vpop.f32.mrf.mxu1 }
 0x10e   :  { %v3960_v29 = vpop.f32.mrf.mxu0  ;;  %v1750_v22 = vadd.f32 %v1749_v28, %v3991_v52 }
 0x10f   :  { %4451 = vst [vmem:[#allocation12_spill] sm:$0xff] %v3960_v29  ;;  %v1751_v30 = vpop.f32.mrf.mxu1 }
 0x110   :  { %v3962_v31 = vpop.f32.mrf.mxu0  ;;  %v1752_v24 = vadd.f32 %v1751_v30, %v3985_v49 }
 0x111   :  { %4452 = vst [vmem:[#allocation13_spill] sm:$0xff] %v3962_v31  ;;  %v1753_v32 = vpop.f32.mrf.mxu1 }
 0x112   :  { %v3964_v33 = vpop.f32.mrf.mxu0  ;;  %v1754_v26 = vadd.f32 %v1753_v32, %v3991_v52 }
 0x113   :  { %4453 = vst [vmem:[#allocation14_spill] sm:$0xff] %v3964_v33  ;;  %v1757_v34 = vpop.f32.mrf.mxu1 }
 0x114   :  { %v3966_v36 = vpop.f32.mrf.mxu0 }
 0x115   :  { %4454 = vst [vmem:[#allocation15_spill] sm:$0xff] %v3966_v36  ;;  %v1759_v37 = vpop.f32.mrf.mxu1 }
 0x116   :  { %v3968_v38 = vpop.f32.mrf.mxu0  ;;  %v1760_v30 = vadd.f32 %v1759_v37, %v3991_v52 }
 0x117   :  { %4455 = vst [vmem:[#allocation16_spill] sm:$0xff] %v3968_v38  ;;  %v1761_v39 = vpop.f32.mrf.mxu1 }
 0x118   :  { %v3972_v41 = vpop.f32.mrf.mxu0  ;;  %v1762_v32 = vadd.f32 %v1761_v39, %v3985_v49 }
 0x119   :  { %4456 = vst [vmem:[#allocation17_spill] sm:$0xff] %v3972_v41  ;;  %v1763_v42 = vpop.f32.mrf.mxu1 }
 0x11a   :  { %v3977_v44 = vpop.f32.mrf.mxu0 }
 0x11b   :  { %4457 = vst [vmem:[#allocation18_spill] sm:$0xff] %v3977_v44  ;;  %v1767_v45 = vpop.f32.mrf.mxu1 }
 0x11c   :  { %v3980_v46 = vpop.f32.mrf.mxu0  ;;  %v1768_v37 = vadd.f32 %v1767_v45, %v3985_v49 }
 0x11d   :  { %4458 = vst [vmem:[#allocation19_spill] sm:$0xff] %v3980_v46  ;;  %v1769_v47 = vpop.f32.mrf.mxu1 }
 0x11e   :  { %v3987_v50 = vpop.f32.mrf.mxu0 }
 0x11f   :  { %4459 = vst [vmem:[#allocation20_spill] sm:$0xff] %v3987_v50  ;;  %v1771_v51 = vpop.f32.mrf.mxu1 }
 0x120   :  { %v3993_v53 = vpop.f32.mrf.mxu0 }
 0x121   :  { %4460 = vst [vmem:[#allocation21_spill] sm:$0xff] %v3993_v53  ;;  %v1773_v54 = vpop.f32.mrf.mxu1 }
 0x122   :  { %v1850_v57 = vpop.f32.mrf.mxu0 }
 0x123   :  { %v1777_v56 = vpop.f32.mrf.mxu1  ;;  %v3997_v59 = vadd.f32 %v1850_v57, %v1738_v55 }
 0x124   :  { %v1852_v61 = vpop.f32.mrf.mxu0 }
 0x125   :  { %v1779_v60 = vpop.f32.mrf.mxu1  ;;  %v4000_v3 = vadd.f32 %v1852_v61, %v1740_v58 }
 0x126   :  { %v1854_v43 = vpop.f32.mrf.mxu0 }
 0x127   :  { %v4002_v35 = vpop.f32.mrf.mxu1  ;;  %v4005_v2 = vadd.f32 %v1854_v43, %v1742_v1 }
 0x128   :  { %v1856_v53 = vpop.f32.mrf.mxu0 }
 0x129   :  { %v4007_v18 = vpop.f32.mrf.mxu1  ;;  %v4010_v55 = vadd.f32 %v1856_v53, %v1744_v48 }
 0x12a   :  { %v1860_v8 = vpop.f32.mrf.mxu0 }
 0x12b   :  { %v4012_v57 = vpop.f32.mrf.mxu1  ;;  %v4015_v58 = vadd.f32 %v1860_v8, %v1748_v20  ;;  %v1758_v8 = vadd.f32 %v1757_v34, %v3985_v49  ;;  %v1764_v34 = vadd.f32 %v1763_v42, %v3991_v52 }
 0x12c   :  { %v1862_v50 = vpop.f32.mrf.mxu0 }
 0x12d   :  { %v4017_v61 = vpop.f32.mrf.mxu1  ;;  %v4020_v1 = vadd.f32 %v1862_v50, %v1750_v22 }
 0x12e   :  { %v1864_v46 = vpop.f32.mrf.mxu0 }
 0x12f   :  { %v4022_v43 = vpop.f32.mrf.mxu1  ;;  %v4025_v48 = vadd.f32 %v1864_v46, %v1752_v24 }
 0x130   :  { %v1866_v44 = vpop.f32.mrf.mxu0 }
 0x131   :  { %v4027_v53 = vpop.f32.mrf.mxu1  ;;  %v4030_v28 = vadd.f32 %v1866_v44, %v1754_v26 }
 0x132   :  { %v1870_v41 = vpop.f32.mrf.mxu0 }
 0x133   :  { %v4032_v20 = vpop.f32.mrf.mxu1  ;;  %v4035_v50 = vadd.f32 %v1870_v41, %v1758_v8 }
 0x134   :  { %v1872_v38 = vpop.f32.mrf.mxu0 }
 0x135   :  { %v4037_v22 = vpop.f32.mrf.mxu1  ;;  %v4040_v46 = vadd.f32 %v1872_v38, %v1760_v30  ;;  %v1770_v38 = vadd.f32 %v1769_v47, %v3991_v52 }
 0x136   :  { %v1874_v36 = vpop.f32.mrf.mxu0 }
 0x137   :  { %v4042_v24 = vpop.f32.mrf.mxu1  ;;  %v4045_v44 = vadd.f32 %v1874_v36, %v1762_v32  ;;  %v1772_v36 = vadd.f32 %v1771_v51, %v3985_v49  ;;  %v1780_v51 = vadd.f32 %v1779_v60, %v3991_v52  ;;  %v1784_v60 = vadd.f32 %v4007_v18, %v3991_v52 }
 0x138   :  { %v1876_v33 = vpop.f32.mrf.mxu0  ;;  %v1790_v18 = vadd.f32 %v4017_v61, %v3991_v52  ;;  %v1794_v61 = vadd.f32 %v4027_v53, %v3991_v52  ;;  %v1800_v53 = vadd.f32 %v4037_v22, %v3991_v52 }
 0x139   :  { %v4047_v26 = vpop.f32.mrf.mxu1  ;;  %v4050_v41 = vadd.f32 %v1876_v33, %v1764_v34  ;;  %v1774_v33 = vadd.f32 %v1773_v54, %v3991_v52 }
 0x13a   :  { %v1880_v31 = vpop.f32.mrf.mxu0 }
 0x13b   :  { %v4052_v8 = vpop.f32.mrf.mxu1  ;;  %v4055_v39 = vadd.f32 %v1880_v31, %v1768_v37  ;;  %v1778_v31 = vadd.f32 %v1777_v56, %v3985_v49 }
 0x13c   :  { %v1882_v29 = vpop.f32.mrf.mxu0  ;;  %v1808_v22 = vadd.f32 %v4052_v8, %v3985_v49 }
 0x13d   :  { %v4057_v30 = vpop.f32.mrf.mxu1  ;;  %v4060_v42 = vadd.f32 %v1882_v29, %v1770_v38 }
 0x13e   :  { %v1884_v27 = vpop.f32.mrf.mxu0 }
 0x13f   :  { %v4062_v32 = vpop.f32.mrf.mxu1  ;;  %v4065_v45 = vadd.f32 %v1884_v27, %v1772_v36  ;;  %v1782_v27 = vadd.f32 %v4002_v35, %v3985_v49  ;;  %v1788_v35 = vadd.f32 %v4012_v57, %v3985_v49  ;;  %v1792_v57 = vadd.f32 %v4022_v43, %v3985_v49 }
 0x140   :  { %v1886_v25 = vpop.f32.mrf.mxu0  ;;  %v1798_v43 = vadd.f32 %v4032_v20, %v3985_v49 }
 0x141   :  { %v4067_v34 = vpop.f32.mrf.mxu1  ;;  %v4070_v47 = vadd.f32 %v1886_v25, %v1774_v33 }
 0x142   :  { %v1890_v37 = vpop.f32.mrf.mxu0 }
 0x143   :  { %v1963_v23 = vpop.f32.mrf.mxu1  ;;  %v4073_v29 = vadd.f32 %v1890_v37, %v1778_v31 }
 0x144   :  { %v4076_v38 = vadd.f32 %v1963_v23, %v3997_v59  ;;  %v1892_v21 = vpop.f32.mrf.mxu0 }
 0x145   :  { %v1965_v54 = vpop.f32.mrf.mxu1  ;;  %v4080_v36 = vadd.f32 %v1892_v21, %v1780_v51 }
 0x146   :  { %4461 = vst [vmem:[#allocation22_spill] sm:$0xff] %v4076_v38  ;;  %v4083_v56 = vadd.f32 %v1965_v54, %v4000_v3  ;;  %v1894_v25 = vpop.f32.mrf.mxu0 }
 0x147   :  { %v1967_v33 = vpop.f32.mrf.mxu1  ;;  %v4087_v31 = vadd.f32 %v1894_v25, %v1782_v27 }
 0x148   :  { %4462 = vst [vmem:[#allocation23_spill] sm:$0xff] %v4083_v56  ;;  %v4090_v23 = vadd.f32 %v1967_v33, %v4005_v2  ;;  %v1896_v59 = vpop.f32.mrf.mxu0 }
 0x149   :  { %v1969_v37 = vpop.f32.mrf.mxu1  ;;  %v4094_v21 = vadd.f32 %v1896_v59, %v1784_v60 }
 0x14a   :  { %4463 = vst [vmem:[#allocation24_spill] sm:$0xff] %v4090_v23  ;;  %v4097_v3 = vadd.f32 %v1969_v37, %v4010_v55  ;;  %v1900_v51 = vpop.f32.mrf.mxu0 }
 0x14b   :  { %v1973_v54 = vpop.f32.mrf.mxu1  ;;  %v4101_v27 = vadd.f32 %v1900_v51, %v1788_v35 }
 0x14c   :  { %4464 = vst [vmem:[#allocation25_spill] sm:$0xff] %v4097_v3  ;;  %v4104_v2 = vadd.f32 %v1973_v54, %v4015_v58  ;;  %v1902_v25 = vpop.f32.mrf.mxu0 }
 0x14d   :  { %v1975_v33 = vpop.f32.mrf.mxu1  ;;  %v4108_v60 = vadd.f32 %v1902_v25, %v1790_v18 }
 0x14e   :  { %4465 = vst [vmem:[#allocation26_spill] sm:$0xff] %v4104_v2  ;;  %v4111_v55 = vadd.f32 %v1975_v33, %v4020_v1  ;;  %v1904_v59 = vpop.f32.mrf.mxu0 }
 0x14f   :  { %4466 = vst [vmem:[#allocation27_spill] sm:$0xff] %v4108_v60  ;;  %v1977_v37 = vpop.f32.mrf.mxu1  ;;  %v4115_v35 = vadd.f32 %v1904_v59, %v1792_v57 }
 0x150   :  { %4467 = vst [vmem:[#allocation28_spill] sm:$0xff] %v4111_v55  ;;  %v4118_v58 = vadd.f32 %v1977_v37, %v4025_v48  ;;  %v1906_v51 = vpop.f32.mrf.mxu0  ;;  %v1802_v37 = vadd.f32 %v4042_v24, %v3985_v49  ;;  %v1810_v24 = vadd.f32 %v4057_v30, %v3991_v52 }
 0x151   :  { %4468 = vst [vmem:[#allocation29_spill] sm:$0xff] %v4115_v35  ;;  %v1979_v54 = vpop.f32.mrf.mxu1  ;;  %v4122_v18 = vadd.f32 %v1906_v51, %v1794_v61 }
 0x152   :  { %4469 = vst [vmem:[#allocation30_spill] sm:$0xff] %v4118_v58  ;;  %v4125_v1 = vadd.f32 %v1979_v54, %v4030_v28  ;;  %v1910_v25 = vpop.f32.mrf.mxu0  ;;  %v1804_v28 = vadd.f32 %v4047_v26, %v3991_v52 }
 0x153   :  { %4470 = vst [vmem:[#allocation31_spill] sm:$0xff] %v4122_v18  ;;  %v1983_v33 = vpop.f32.mrf.mxu1  ;;  %v4129_v57 = vadd.f32 %v1910_v25, %v1798_v43 }
 0x154   :  { %4471 = vst [vmem:[#allocation32_spill] sm:$0xff] %v4125_v1  ;;  %v1912_v59 = vpop.f32.mrf.mxu0 }
 0x155   :  { %4472 = vst [vmem:[#allocation33_spill] sm:$0xff] %v4129_v57  ;;  %v1985_v48 = vpop.f32.mrf.mxu1  ;;  %v4133_v58 = vadd.f32 %v1912_v59, %v1800_v53 }
 0x156   :  { %v1914_v20 = vpop.f32.mrf.mxu0 }
 0x157   :  { %4473 = vst [vmem:[#allocation34_spill] sm:$0xff] %v4133_v58  ;;  %v1987_v61 = vpop.f32.mrf.mxu1  ;;  %v4137_v51 = vadd.f32 %v1914_v20, %v1802_v37  ;;  %v1812_v37 = vadd.f32 %v4062_v32, %v3985_v49 }
 0x158   :  { %v1916_v54 = vpop.f32.mrf.mxu0 }
 0x159   :  { %4474 = vst [vmem:[#allocation35_spill] sm:$0xff] %v4137_v51  ;;  %v4139_v1 = vpop.f32.mrf.mxu1  ;;  %v4143_v43 = vadd.f32 %v1916_v54, %v1804_v28  ;;  %v1814_v28 = vadd.f32 %v4067_v34, %v3991_v52 }
 0x15a   :  { %v1920_v25 = vpop.f32.mrf.mxu0 }
 0x15b   :  { %4475 = vst [vmem:[#allocation36_spill] sm:$0xff] %v4143_v43  ;;  %v4145_v55 = vpop.f32.mrf.mxu1  ;;  %v4149_v53 = vadd.f32 %v1920_v25, %v1808_v22 }
 0x15c   :  { %v1922_v59 = vpop.f32.mrf.mxu0 }
 0x15d   :  { %4476 = vst [vmem:[#allocation37_spill] sm:$0xff] %v4149_v53  ;;  %v4151_v26 = vpop.f32.mrf.mxu1  ;;  %v4155_v20 = vadd.f32 %v1922_v59, %v1810_v24 }
 0x15e   :  { %v1924_v51 = vpop.f32.mrf.mxu0 }
 0x15f   :  { %4477 = vst [vmem:[#allocation38_spill] sm:$0xff] %v4155_v20  ;;  %v4157_v8 = vpop.f32.mrf.mxu1  ;;  %v4161_v54 = vadd.f32 %v1924_v51, %v1812_v37 }
 0x160   :  { %v1926_v43 = vpop.f32.mrf.mxu0 }
 0x161   :  { %4478 = vst [vmem:[#allocation39_spill] sm:$0xff] %v4161_v54  ;;  %v4163_v30 = vpop.f32.mrf.mxu1  ;;  %v4165_v22 = vadd.f32 %v1926_v43, %v1814_v28 }
 0x162   :  { %v4169_v53 = vpop.f32.mrf.mxu0 }
 0x163   :  { %4479 = vst [vmem:[#allocation40_spill] sm:$0xff] %v4165_v22  ;;  %v4167_v25 = vpop.f32.mrf.mxu1  ;;  %4480 = vst [vmem:[#allocation41_spill] sm:$0xff] %v4169_v53 }
 0x164   :  { %v4173_v32 = vpop.f32.mrf.mxu0 }
 0x165   :  { %v4171_v49 = vpop.f32.mrf.mxu1  ;;  %4481 = vst [vmem:[#allocation42_spill] sm:$0xff] %v4173_v32 }
 0x166   :  { %v4177_v59 = vpop.f32.mrf.mxu0 }
 0x167   :  { %v4175_v24 = vpop.f32.mrf.mxu1  ;;  %4482 = vst [vmem:[#allocation43_spill] sm:$0xff] %v4177_v59 }
 0x168   :  { %v4181_v34 = vpop.f32.mrf.mxu0 }
 0x169   :  { %v4179_v52 = vpop.f32.mrf.mxu1  ;;  %4483 = vst [vmem:[#allocation44_spill] sm:$0xff] %v4181_v34 }
 0x16a   :  { %v4185_v43 = vpop.f32.mrf.mxu0 }
 0x16b   :  { %v4183_v51 = vpop.f32.mrf.mxu1  ;;  %4484 = vst [vmem:[#allocation45_spill] sm:$0xff] %v4185_v43 }
 0x16c   :  { %v4189_v28 = vpop.f32.mrf.mxu0 }
 0x16d   :  { %v4187_v37 = vpop.f32.mrf.mxu1  ;;  %4486 = vst [vmem:[#allocation47_spill] sm:$0xff] %v4189_v28 }
 0x16e   :  { %4485 = vst [vmem:[#allocation46_spill] sm:$0xff] %v4187_v37  ;;  %v4193_v54 = vpop.f32.mrf.mxu0 }
 0x16f   :  { %v4191_v22 = vpop.f32.mrf.mxu1  ;;  %4488 = vst [vmem:[#allocation49_spill] sm:$0xff] %v4193_v54 }
 0x170   :  { %4487 = vst [vmem:[#allocation48_spill] sm:$0xff] %v4191_v22  ;;  %v4197_v58 = vpop.f32.mrf.mxu0 }
 0x171   :  { %v4195_v20 = vpop.f32.mrf.mxu1  ;;  %4490 = vst [vmem:[#allocation51_spill] sm:$0xff] %v4197_v58 }
 0x172   :  { %4489 = vst [vmem:[#allocation50_spill] sm:$0xff] %v4195_v20  ;;  %v2096_v3 = vpop.f32.mrf.mxu0 }
 0x173   :  { %v4199_v2 = vpop.f32.mrf.mxu1 }
 0x174   :  { %4491 = vst [vmem:[#allocation52_spill] sm:$0xff] %v4199_v2  ;;  %v2098_v59 = vpop.f32.mrf.mxu0  ;;  %v1984_v2 = vadd.f32 %v1983_v33, %v4035_v50 }
 0x175   :  { %v4201_v34 = vpop.f32.mrf.mxu1 }
 0x176   :  { %4492 = vst [vmem:[#allocation53_spill] sm:$0xff] %v4201_v34  ;;  %v2100_v43 = vpop.f32.mrf.mxu0  ;;  %v57_v34 = vld [vmem:[%s4438_s3] sm:$0x3]  ;;  %v2097_v18 = vadd.f32 %v2096_v3, %v1984_v2  ;;  %s3056_s3 = smov [#allocation2]  }
 0x177   :  { %v4203_v23 = vpop.f32.mrf.mxu1  ;;  %v4227_v6 = vrot.slane %v57_v34, %v4499_v7  ;;  %s2369_s12 = sshll.u32 %s3056_s3, 4  ;;  %s2370_s12 = int_to_ptr.vmem [resolvable:$true] %s2369_s12 }
 0x178   :  { %4493 = vst [vmem:[#allocation54_spill] sm:$0xff] %v4203_v23  ;;  %v2102_v28 = vpop.f32.mrf.mxu0  ;;  %s3032_s13 = scalar_lea.vmem %s2370_s12, 4096  ;;  %p3037_p1 = scmp.lt.s32.totalorder %s2370_s12, %s2370_s12 }
 0x179   :  { %v4205_v32 = vpop.f32.mrf.mxu1  ;;  %p3033_p0 = scmp.ne.s32.totalorder %s2370_s12, %s3032_s13  ;;  %p3038_p2 = scmp.lt.s32.totalorder %s3032_s13, %s3032_s13 }
 0x17a   :  { %4494 = vst [vmem:[#allocation55_spill] sm:$0xff] %v4205_v32  ;;  %v2106_v53 = vpop.f32.mrf.mxu0  ;;  %v1986_v32 = vadd.f32 %v1985_v48, %v4040_v46 }
 0x17b   :  { %v4207_v56 = vpop.f32.mrf.mxu1  ;;  %p3039_p3 = por %p3038_p2, %p3037_p1 }
 0x17c   :  { %4495 = vst [vmem:[#allocation56_spill] sm:$0xff] %v4207_v56  ;;  %v2108_v38 = vpop.f32.mrf.mxu0  ;;  %v4498_v56 = vsub.s32 0, %v3970_v40  ;;  %v2099_v37 = vadd.f32 %v2098_v59, %v1986_v32  ;;  %v1994_v40 = vadd.f32 %v4145_v55, %v4055_v39 }
 0x17d   :  { %v4209_v54 = vpop.f32.mrf.mxu1  ;;  %p3040_p4 = pnand %p3039_p3, %p3033_p0 }
 0x17e   :  { %4496 = vst [vmem:[#allocation57_spill] sm:$0xff] %v4209_v54  ;;  %v2110_v58 = vpop.f32.mrf.mxu0  ;;  %v4222_v22 = vrot.slane %v57_v34, %v4498_v56  ;;  %v1990_v56 = vadd.f32 %v4139_v1, %v4050_v41  ;;  %v1996_v41 = vadd.f32 %v4151_v26, %v4060_v42  ;;  %v258_v34 = vadd.f32 %v3938_v12, %v4227_v6 }
 0x17f   :  { %v4211_v57 = vpop.f32.mrf.mxu1 }
 0x180   :  { %4497 = vst [vmem:[#allocation58_spill] sm:$0xff] %v4211_v57  ;;  %v2112_v20 = vpop.f32.mrf.mxu0  ;;  %v1988_v57 = vadd.f32 %v1987_v61, %v4045_v44  ;;  %v252_v50 = vadd.f32 %v3932_v9, %v4222_v22  ;;  %v254_v44 = vadd.f32 %v3934_v10, %v4227_v6  ;;  %v256_v59 = vadd.f32 %v3936_v11, %v4222_v22 }
 0x181   :  { %v4217_v23 = vpop.f32.mrf.mxu1  ;;  %v2107_v10 = vadd.f32 %v2106_v53, %v1994_v40  ;;  %v262_v53 = vadd.f32 %v3940_v13, %v4222_v22 }
 0x182   :  { %v2116_v54 = vpop.f32.mrf.mxu0  ;;  %v2101_v3 = vadd.f32 %v2100_v43, %v1988_v57  ;;  %v1998_v43 = vadd.f32 %v4157_v8, %v4065_v45 }
 0x183   :  { %v2209_v35 = vpop.f32.mrf.mxu1 }
 0x184   :  { %v2210_v60 = vadd.f32 %v2209_v35, %v2097_v18  ;;  %v4231_v33 = vpop.f32.mrf.mxu0  ;;  %v2103_v18 = vadd.f32 %v2102_v28, %v1990_v56  ;;  %v2109_v28 = vadd.f32 %v2108_v38, %v1996_v41  ;;  %v264_v38 = vadd.f32 %v3942_v14, %v4227_v6 }
 0x185   :  { %v2211_v46 = vpop.f32.mrf.mxu1 }
 0x186   :  { %v2276_v2 = vmax.f32 %v2210_v60, 0.0  ;;  %v2212_v48 = vadd.f32 %v2211_v46, %v2099_v37  ;;  %v4239_v7 = vpop.f32.mrf.mxu0  ;;  %v2000_v46 = vadd.f32 %v4163_v30, %v4070_v47 }
 0x187   :  { %v2213_v35 = vpop.f32.mrf.mxu1 }
 0x188   :  { %v2308_v9 = vadd.f32 %v2276_v2, %v252_v50  ;;  %v2277_v61 = vmax.f32 %v2212_v48, 0.0  ;;  %v2214_v32 = vadd.f32 %v2213_v35, %v2101_v3  ;;  %v4245_v60 = vpop.f32.mrf.mxu0  ;;  %v2111_v3 = vadd.f32 %v2110_v58, %v1998_v43 }
 0x189   :  { %v2215_v1 = vpop.f32.mrf.mxu1  ;;  %v2004_v48 = vadd.f32 %v4167_v25, %v4073_v29  ;;  %v2113_v40 = vadd.f32 %v2112_v20, %v2000_v46  ;;  %v266_v58 = vadd.f32 %v3944_v15, %v4222_v22  ;;  %v4273_v20 = vadd.f32 %v3908_v62, %v4222_v22  ;;  %v4504_v46 = vld [vmem:[#allocation46_spill] sm:$0xff] }
 0x18a   :  { %2340 = vst [vmem:[#allocation2 + $0x40] sm:$0xff] %v2308_v9  ;;  %v2309_v57 = vadd.f32 %v2277_v61, %v254_v44  ;;  %v2278_v39 = vmax.f32 %v2214_v32, 0.0  ;;  %v2216_v55 = vadd.f32 %v2215_v1, %v2103_v18  ;;  %v4251_v37 = vpop.f32.mrf.mxu0  ;;  %v2006_v18 = vadd.f32 %v4171_v49, %v4080_v36 }
 0x18b   :  { %v2219_v11 = vpop.f32.mrf.mxu1  ;;  %v2117_v61 = vadd.f32 %v2116_v54, %v2004_v48  ;;  %v2008_v15 = vadd.f32 %v4175_v24, %v4087_v31  ;;  %v4288_v62 = vadd.f32 %v3914_v0, %v4222_v22  ;;  %v2010_v31 = vadd.f32 %v4179_v52, %v4094_v21  ;;  %v4505_v48 = vld [vmem:[#allocation9_spill] sm:$0xff] }
 0x18c   :  { %2341 = vst [vmem:[#allocation2 + $0x48] sm:$0xff] %v2309_v57  ;;  %v2310_v42 = vadd.f32 %v2278_v39, %v256_v59  ;;  %v2279_v26 = vmax.f32 %v2216_v55, 0.0  ;;  %v2220_v50 = vadd.f32 %v2219_v11, %v2107_v10  ;;  %v4257_v56 = vpop.f32.mrf.mxu0  ;;  %v268_v59 = vadd.f32 %v3946_v16, %v4227_v6 }
 0x18d   :  { %v2221_v12 = vpop.f32.mrf.mxu1  ;;  %v2119_v49 = vadd.f32 %v4231_v33, %v2006_v18  ;;  %v4284_v57 = vadd.f32 %v3912_v63, %v4227_v6  ;;  %v272_v16 = vadd.f32 %v3948_v17, %v4222_v22  ;;  %v2121_v39 = vadd.f32 %v4239_v7, %v2008_v15  ;;  %v4509_v18 = vld [vmem:[#allocation48_spill] sm:$0xff] }
 0x18e   :  { %2342 = vst [vmem:[#allocation2 + $0x50] sm:$0xff] %v2310_v42  ;;  %v2311_v45 = vadd.f32 %v2279_v26, %v258_v34  ;;  %v2280_v8 = vmax.f32 %v2220_v50, 0.0  ;;  %v2222_v2 = vadd.f32 %v2221_v12, %v2109_v28  ;;  %v4263_v44 = vpop.f32.mrf.mxu0  ;;  %v4299_v43 = vadd.f32 %v3922_v4, %v4227_v6  ;;  %v4500_v26 = vld [vmem:[#allocation5_spill] sm:$0xff]  ;;  %v4510_v15 = vld [vmem:[#allocation12_spill] sm:$0xff] }
 0x18f   :  { %v2223_v13 = vpop.f32.mrf.mxu1  ;;  %v4303_v0 = vadd.f32 %v3924_v5, %v4222_v22  ;;  %v274_v17 = vadd.f32 %v3950_v19, %v4227_v6  ;;  %v2014_v21 = vadd.f32 %v4183_v51, %v4101_v27  ;;  %v2123_v11 = vadd.f32 %v4245_v60, %v2010_v31  ;;  %v4501_v5 = vld [vmem:[#allocation6_spill] sm:$0xff]  ;;  %v4502_v19 = vld [vmem:[#allocation8_spill] sm:$0xff]  ;;  %v4503_v51 = vld [vmem:[#allocation27_spill] sm:$0xff] }
 0x190   :  { %2343 = vst [vmem:[#allocation2 + $0x58] sm:$0xff] %v2311_v45  ;;  %v2312_v47 = vadd.f32 %v2280_v8, %v262_v53  ;;  %v2281_v30 = vmax.f32 %v2222_v2, 0.0  ;;  %v2224_v35 = vadd.f32 %v2223_v13, %v2111_v3  ;;  %v4269_v9 = vpop.f32.mrf.mxu0  ;;  %v4314_v50 = vadd.f32 %v4500_v26, %v4227_v6  ;;  %v4514_v31 = vld [vmem:[#allocation50_spill] sm:$0xff]  ;;  %v4518_v26 = vld [vmem:[#allocation33_spill] sm:$0xff] }
 0x191   :  { %v2225_v14 = vpop.f32.mrf.mxu1  ;;  %v4318_v53 = vadd.f32 %v4501_v5, %v4222_v22  ;;  %v276_v27 = vadd.f32 %v4502_v19, %v4222_v22  ;;  %v2016_v12 = vadd.f32 %v4504_v46, %v4503_v51  ;;  %v2127_v45 = vadd.f32 %v4251_v37, %v2014_v21  ;;  %v4515_v21 = vld [vmem:[#allocation15_spill] sm:$0xff]  ;;  %v4519_v5 = vld [vmem:[#allocation52_spill] sm:$0xff] }
 0x192   :  { %2344 = vst [vmem:[#allocation2 + $0x60] sm:$0xff] %v2312_v47  ;;  %v2313_v29 = vadd.f32 %v2281_v30, %v264_v38  ;;  %v2282_v25 = vmax.f32 %v2224_v35, 0.0  ;;  %v2226_v32 = vadd.f32 %v2225_v14, %v2113_v40  ;;  %v4279_v41 = vpop.f32.mrf.mxu0  ;;  %v278_v13 = vadd.f32 %v4505_v48, %v4227_v6  ;;  %v4506_v40 = vld [vmem:[#allocation10_spill] sm:$0xff]  ;;  %v4507_v30 = vld [vmem:[#allocation11_spill] sm:$0xff] }
 0x193   :  { %v2229_v36 = vpop.f32.mrf.mxu1  ;;  %v282_v47 = vadd.f32 %v4506_v40, %v4222_v22  ;;  %v284_v35 = vadd.f32 %v4507_v30, %v4227_v6  ;;  %v2129_v37 = vadd.f32 %v4257_v56, %v2016_v12  ;;  %v2024_v19 = vadd.f32 %v4519_v5, %v4518_v26  ;;  %v4522_v48 = vld [vmem:[#allocation22_spill] sm:$0xff]  ;;  %v4524_v30 = vld [vmem:[#allocation23_spill] sm:$0xff]  ;;  %v4534_v26 = vld [vmem:[#allocation28_spill] sm:$0xff] }
 0x194   :  { %2345 = vst [vmem:[#allocation2 + $0x68] sm:$0xff] %v2313_v29  ;;  %v2314_v54 = vadd.f32 %v2282_v25, %v266_v58  ;;  %v2283_v1 = vmax.f32 %v2226_v32, 0.0  ;;  %v2230_v10 = vadd.f32 %v2229_v36, %v2117_v61  ;;  %v4294_v24 = vpop.f32.mrf.mxu0  ;;  %v4508_v58 = vld [vmem:[#allocation29_spill] sm:$0xff]  ;;  %v286_v36 = vadd.f32 %v4510_v15, %v4222_v22  ;;  %v4535_v5 = vld [vmem:[#allocation47_spill] sm:$0xff] }
 0x195   :  { %v2231_v33 = vpop.f32.mrf.mxu1  ;;  %v2018_v14 = vadd.f32 %v4509_v18, %v4508_v58  ;;  %v4525_v58 = vld [vmem:[#allocation42_spill] sm:$0xff] }
 0x196   :  { %2346 = vst [vmem:[#allocation2 + $0x70] sm:$0xff] %v2314_v54  ;;  %v2315_v55 = vadd.f32 %v2283_v1, %v268_v59  ;;  %v2284_v34 = vmax.f32 %v2230_v10, 0.0  ;;  %v2232_v63 = vadd.f32 %v2231_v33, %v2119_v49  ;;  %v4309_v52 = vpop.f32.mrf.mxu0  ;;  %v4511_v49 = vld [vmem:[#allocation13_spill] sm:$0xff]  ;;  %v4512_v1 = vld [vmem:[#allocation14_spill] sm:$0xff]  ;;  %v2079_v18 = vadd.f32 %v4525_v58, %v4524_v30 }
 0x197   :  { %v2233_v7 = vpop.f32.mrf.mxu1  ;;  %v288_v54 = vadd.f32 %v4511_v49, %v4227_v6  ;;  %v292_v10 = vadd.f32 %v4512_v1, %v4222_v22  ;;  %v2131_v56 = vadd.f32 %v4263_v44, %v2018_v14  ;;  %v4528_v49 = vld [vmem:[#allocation25_spill] sm:$0xff]  ;;  %v4529_v1 = vld [vmem:[#allocation44_spill] sm:$0xff] }
 0x198   :  { %2347 = vst [vmem:[#allocation2 + $0x78] sm:$0xff] %v2315_v55  ;;  %v2316_v28 = vadd.f32 %v2284_v34, %v272_v16  ;;  %v2285_v42 = vmax.f32 %v2232_v63, 0.0  ;;  %v2234_v4 = vadd.f32 %v2233_v7, %v2121_v39  ;;  %v4324_v3 = vpop.f32.mrf.mxu0  ;;  %v4513_v16 = vld [vmem:[#allocation31_spill] sm:$0xff]  ;;  %v4351_v7 = vadd.f32 %v4515_v21, %v4227_v6 }
 0x199   :  { %v2235_v60 = vpop.f32.mrf.mxu1  ;;  %v2020_v33 = vadd.f32 %v4514_v31, %v4513_v16  ;;  %v2083_v16 = vadd.f32 %v4529_v1, %v4528_v49  ;;  %v4530_v31 = vld [vmem:[#allocation26_spill] sm:$0xff] }
 0x19a   :  { %2348 = vst [vmem:[#allocation2 + $0x80] sm:$0xff] %v2316_v28  ;;  %v2317_v8 = vadd.f32 %v2285_v42, %v274_v17  ;;  %v2286_v2 = vmax.f32 %v2234_v4, 0.0  ;;  %v2236_v38 = vadd.f32 %v2235_v60, %v2123_v11  ;;  %v4335_v61 = vpop.f32.mrf.mxu0  ;;  %v4516_v11 = vld [vmem:[#allocation16_spill] sm:$0xff]  ;;  %v4517_v42 = vld [vmem:[#allocation17_spill] sm:$0xff] }
 0x19b   :  { %v2239_v29 = vpop.f32.mrf.mxu1  ;;  %v4355_v28 = vadd.f32 %v4516_v11, %v4222_v22  ;;  %v4359_v4 = vadd.f32 %v4517_v42, %v4227_v6  ;;  %v2133_v51 = vadd.f32 %v4269_v9, %v2020_v33  ;;  %v4531_v33 = vld [vmem:[#allocation45_spill] sm:$0xff] }
 0x19c   :  { %2349 = vst [vmem:[#allocation2 + $0x88] sm:$0xff] %v2317_v8  ;;  %v2318_v25 = vadd.f32 %v2286_v2, %v276_v27  ;;  %v2287_v32 = vmax.f32 %v2236_v38, 0.0  ;;  %v2240_v59 = vadd.f32 %v2239_v29, %v2127_v45  ;;  %v4346_v39 = vpop.f32.mrf.mxu0  ;;  %v4520_v45 = vld [vmem:[#allocation18_spill] sm:$0xff]  ;;  %v4521_v2 = vld [vmem:[#allocation19_spill] sm:$0xff] }
 0x19d   :  { %v2241_v55 = vpop.f32.mrf.mxu1  ;;  %v4368_v8 = vadd.f32 %v4520_v45, %v4222_v22  ;;  %v4372_v38 = vadd.f32 %v4521_v2, %v4227_v6 }
 0x19e   :  { %2350 = vst [vmem:[#allocation2 + $0x90] sm:$0xff] %v2318_v25  ;;  %v2319_v34 = vadd.f32 %v2287_v32, %v278_v13  ;;  %v2288_v63 = vmax.f32 %v2240_v59, 0.0  ;;  %v2242_v17 = vadd.f32 %v2241_v55, %v2129_v37  ;;  %v4363_v44 = vpop.f32.mrf.mxu0  ;;  %v4523_v13 = vld [vmem:[#allocation41_spill] sm:$0xff]  ;;  %v4526_v32 = vld [vmem:[#allocation24_spill] sm:$0xff]  ;;  %v4527_v59 = vld [vmem:[#allocation43_spill] sm:$0xff]  ;;  %v2087_v55 = vadd.f32 %v4531_v33, %v4530_v31 }
 0x19f   :  { %v2243_v27 = vpop.f32.mrf.mxu1  ;;  %v2077_v40 = vadd.f32 %v4523_v13, %v4522_v48  ;;  %v2081_v15 = vadd.f32 %v4527_v59, %v4526_v32 }
 0x1a0   :  { %2351 = vst [vmem:[#allocation2 + $0x98] sm:$0xff] %v2319_v34  ;;  %v2320_v46 = vadd.f32 %v2288_v63, %v282_v47  ;;  %v2289_v12 = vmax.f32 %v2242_v17, 0.0  ;;  %v2244_v60 = vadd.f32 %v2243_v27, %v2131_v56  ;;  %v4378_v14 = vpop.f32.mrf.mxu0  ;;  %v2137_v47 = vadd.f32 %v4279_v41, %v2024_v19  ;;  %v4532_v56 = vld [vmem:[#allocation34_spill] sm:$0xff]  ;;  %v4533_v34 = vld [vmem:[#allocation53_spill] sm:$0xff]  ;;  %v4536_v27 = vld [vmem:[#allocation35_spill] sm:$0xff] }
 0x1a1   :  { %v2245_v9 = vpop.f32.mrf.mxu1  ;;  %v2026_v63 = vadd.f32 %v4533_v34, %v4532_v56  ;;  %v2089_v19 = vadd.f32 %v4535_v5, %v4534_v26  ;;  %v4543_v56 = vld [vmem:[#allocation56_spill] sm:$0xff]  ;;  %v4547_v26 = vld [vmem:[#allocation58_spill] sm:$0xff] }
 0x1a2   :  { %2352 = vst [vmem:[#allocation2 + $0xa0] sm:$0xff] %v2320_v46  ;;  %v2321_v29 = vadd.f32 %v2289_v12, %v284_v35  ;;  %v2290_v37 = vmax.f32 %v2244_v60, 0.0  ;;  %v2246_v25 = vadd.f32 %v2245_v9, %v2133_v51  ;;  %v2189_v17 = vpop.f32.mrf.mxu0  ;;  %v4537_v51 = vld [vmem:[#allocation54_spill] sm:$0xff]  ;;  %v4538_v12 = vld [vmem:[#allocation36_spill] sm:$0xff]  ;;  %v4539_v60 = vld [vmem:[#allocation55_spill] sm:$0xff] }
 0x1a3   :  { %v2249_v21 = vpop.f32.mrf.mxu1  ;;  %v2190_v35 = vadd.f32 %v2189_v17, %v2077_v40  ;;  %v2028_v46 = vadd.f32 %v4537_v51, %v4536_v27  ;;  %v2030_v45 = vadd.f32 %v4539_v60, %v4538_v12  ;;  %v2139_v2 = vadd.f32 %v4294_v24, %v2026_v63  ;;  %v4540_v40 = vld [vmem:[#allocation30_spill] sm:$0xff]  ;;  %v4545_v63 = vld [vmem:[#allocation57_spill] sm:$0xff] }
 0x1a4   :  { %2353 = vst [vmem:[#allocation2 + $0xa8] sm:$0xff] %v2321_v29  ;;  %v2322_v41 = vadd.f32 %v2290_v37, %v286_v36  ;;  %v2291_v11 = vmax.f32 %v2246_v25, 0.0  ;;  %v2250_v42 = vadd.f32 %v2249_v21, %v2137_v47  ;;  %v2191_v48 = vpop.f32.mrf.mxu0  ;;  %v4541_v47 = vld [vmem:[#allocation49_spill] sm:$0xff] }
 0x1a5   :  { %v2251_v13 = vpop.f32.mrf.mxu1  ;;  %v2268_v58 = vmax.f32 %v2190_v35, 0.0  ;;  %v2192_v9 = vadd.f32 %v2191_v48, %v2079_v18  ;;  %v2091_v29 = vadd.f32 %v4541_v47, %v4540_v40  ;;  %v2141_v37 = vadd.f32 %v4309_v52, %v2028_v46  ;;  %v4544_v18 = vld [vmem:[#allocation38_spill] sm:$0xff]  ;;  %v4548_v40 = vld [vmem:[#allocation32_spill] sm:$0xff]  ;;  %v4549_v47 = vld [vmem:[#allocation51_spill] sm:$0xff] }
 0x1a6   :  { %2354 = vst [vmem:[#allocation2 + $0xb0] sm:$0xff] %v2322_v41  ;;  %v2323_v30 = vadd.f32 %v2291_v11, %v288_v54  ;;  %v2292_v36 = vmax.f32 %v2250_v42, 0.0  ;;  %v2143_v25 = vadd.f32 %v4324_v3, %v2030_v45  ;;  %v2252_v32 = vadd.f32 %v2251_v13, %v2139_v2  ;;  %v2193_v59 = vpop.f32.mrf.mxu0  ;;  %v4542_v54 = vld [vmem:[#allocation37_spill] sm:$0xff] }
 0x1a7   :  { %v2253_v49 = vpop.f32.mrf.mxu1  ;;  %v2300_v24 = vadd.f32 %v2268_v58, %v4273_v20  ;;  %v2269_v31 = vmax.f32 %v2192_v9, 0.0  ;;  %v2194_v33 = vadd.f32 %v2193_v59, %v2081_v15  ;;  %v2034_v34 = vadd.f32 %v4543_v56, %v4542_v54 }
 0x1a8   :  { %2355 = vst [vmem:[#allocation2 + $0xb8] sm:$0xff] %v2323_v30  ;;  %v2324_v1 = vadd.f32 %v2292_v36, %v292_v10  ;;  %v2036_v17 = vadd.f32 %v4545_v63, %v4544_v18  ;;  %v2293_v21 = vmax.f32 %v2252_v32, 0.0  ;;  %v2254_v41 = vadd.f32 %v2253_v49, %v2141_v37  ;;  %v2195_v52 = vpop.f32.mrf.mxu0  ;;  %v4546_v10 = vld [vmem:[#allocation39_spill] sm:$0xff]  ;;  %v4550_v37 = vld [vmem:[#allocation40_spill] sm:$0xff] }
 0x1a9   :  { %v2255_v11 = vpop.f32.mrf.mxu1  ;;  %2332 = vst [vmem:[#allocation2] sm:$0xff] %v2300_v24  ;;  %v2301_v3 = vadd.f32 %v2269_v31, %v4284_v57  ;;  %v2270_v35 = vmax.f32 %v2194_v33, 0.0  ;;  %v2196_v42 = vadd.f32 %v2195_v52, %v2083_v16  ;;  %v2038_v15 = vadd.f32 %v4547_v26, %v4546_v10 }
 0x1aa   :  { %2356 = vst [vmem:[#allocation2 + $0xc0] sm:$0xff] %v2324_v1  ;;  %v2256_v20 = vadd.f32 %v2255_v11, %v2143_v25  ;;  %v2147_v5 = vadd.f32 %v4335_v61, %v2034_v34  ;;  %v2325_v27 = vadd.f32 %v2293_v21, %v4351_v7  ;;  %v2294_v51 = vmax.f32 %v2254_v41, 0.0  ;;  %v2199_v46 = vpop.f32.mrf.mxu0  ;;  %v4553_v41 = vld [vmem:[#allocation21_spill] sm:$0xff] }
 0x1ab   :  { %v2259_v12 = vpop.f32.mrf.mxu1  ;;  %2333 = vst [vmem:[#allocation2 + $0x8] sm:$0xff] %v2301_v3  ;;  %v2302_v60 = vadd.f32 %v2270_v35, %v4288_v62  ;;  %v2271_v45 = vmax.f32 %v2196_v42, 0.0  ;;  %v2200_v48 = vadd.f32 %v2199_v46, %v2087_v55  ;;  %v2149_v57 = vadd.f32 %v4346_v39, %v2036_v17 }
 0x1ac   :  { %v2295_v2 = vmax.f32 %v2256_v20, 0.0  ;;  %v2151_v16 = vadd.f32 %v4363_v44, %v2038_v15  ;;  %2357 = vst [vmem:[#allocation2 + $0xc8] sm:$0xff] %v2325_v27  ;;  %v2326_v13 = vadd.f32 %v2294_v51, %v4355_v28  ;;  %v2260_v30 = vadd.f32 %v2259_v12, %v2147_v5  ;;  %v2201_v61 = vpop.f32.mrf.mxu0 }
 0x1ad   :  { %v2261_v58 = vpop.f32.mrf.mxu1  ;;  %2334 = vst [vmem:[#allocation2 + $0x10] sm:$0xff] %v2302_v60  ;;  %v2303_v7 = vadd.f32 %v2271_v45, %v4299_v43  ;;  %v2272_v9 = vmax.f32 %v2200_v48, 0.0  ;;  %v2202_v62 = vadd.f32 %v2201_v61, %v2089_v19  ;;  %v2093_v55 = vadd.f32 %v4549_v47, %v4548_v40  ;;  %v4551_v19 = vld [vmem:[#allocation20_spill] sm:$0xff] }
 0x1ae   :  { %v2327_v36 = vadd.f32 %v2295_v2, %v4359_v4  ;;  %v2040_v39 = vadd.f32 %v4217_v23, %v4550_v37  ;;  %2358 = vst [vmem:[#allocation2 + $0xd0] sm:$0xff] %v2326_v13  ;;  %v2296_v44 = vmax.f32 %v2260_v30, 0.0  ;;  %v2262_v25 = vadd.f32 %v2261_v58, %v2149_v57  ;;  %v2203_v28 = vpop.f32.mrf.mxu0 }
 0x1af   :  { %v2263_v32 = vpop.f32.mrf.mxu1  ;;  %2335 = vst [vmem:[#allocation2 + $0x18] sm:$0xff] %v2303_v7  ;;  %v2304_v59 = vadd.f32 %v2272_v9, %v4303_v0  ;;  %v2273_v43 = vmax.f32 %v2202_v62, 0.0  ;;  %v2204_v49 = vadd.f32 %v2203_v28, %v2091_v29  ;;  %v306_v24 = vadd.f32 %v4551_v19, %v4222_v22  ;;  %v4552_v22 = vld [vmem:[#allocation7_spill] sm:$0xff] }
 0x1b0   :  { %2359 = vst [vmem:[#allocation2 + $0xd8] sm:$0xff] %v2327_v36  ;;  %v2264_v4 = vadd.f32 %v2263_v32, %v2151_v16  ;;  %v2153_v1 = vadd.f32 %v4378_v14, %v2040_v39  ;;  %v2328_v31 = vadd.f32 %v2296_v44, %v4368_v8  ;;  %v2297_v23 = vmax.f32 %v2262_v25, 0.0  ;;  %v2205_v33 = vpop.f32.mrf.mxu0 }
 0x1b1   :  { %v2265_v54 = vpop.f32.mrf.mxu1  ;;  %2336 = vst [vmem:[#allocation2 + $0x20] sm:$0xff] %v2304_v59  ;;  %v2305_v56 = vadd.f32 %v2273_v43, %v4314_v50  ;;  %v2274_v34 = vmax.f32 %v2204_v49, 0.0  ;;  %v2206_v63 = vadd.f32 %v2205_v33, %v2093_v55  ;;  %v248_v14 = vadd.f32 %v4552_v22, %v4227_v6 }
 0x1b2   :  { %v2298_v18 = vmax.f32 %v2264_v4, 0.0  ;;  %2360 = vst [vmem:[#allocation2 + $0xe0] sm:$0xff] %v2328_v31  ;;  %v2329_v0 = vadd.f32 %v2297_v23, %v4372_v38  ;;  %v2266_v29 = vadd.f32 %v2265_v54, %v2153_v1  ;;  %v308_v50 = vadd.f32 %v4553_v41, %v4227_v6 }
 0x1b3   :  { %2337 = vst [vmem:[#allocation2 + $0x28] sm:$0xff] %v2305_v56  ;;  %v2306_v8 = vadd.f32 %v2274_v34, %v4318_v53  ;;  %v2275_v21 = vmax.f32 %v2206_v63, 0.0 }
 0x1b4   :  { %v2330_v17 = vadd.f32 %v2298_v18, %v306_v24  ;;  %2361 = vst [vmem:[#allocation2 + $0xe8] sm:$0xff] %v2329_v0  ;;  %v2299_v52 = vmax.f32 %v2266_v29, 0.0 }
 0x1b5   :  { %2338 = vst [vmem:[#allocation2 + $0x30] sm:$0xff] %v2306_v8  ;;  %v2307_v11 = vadd.f32 %v2275_v21, %v248_v14 }
 0x1b6   :  { %2362 = vst [vmem:[#allocation2 + $0xf0] sm:$0xff] %v2330_v17  ;;  %v2331_v38 = vadd.f32 %v2299_v52, %v308_v50 }
 0x1b7   :  { %2339 = vst [vmem:[#allocation2 + $0x38] sm:$0xff] %v2307_v11 }
 0x1b8   :  { %2363 = vst [vmem:[#allocation2 + $0xf8] sm:$0xff] %v2331_v38 }
 0x1b9   :  { %3043 = shalt.err (!%p3040_p4)
}
 0x1ba   :  { %s3057_s14 = smov 256   ;;  %s3058_s15 = smov 16  }
 0x1bb   :  { %2375 = dma.vmem_to_hbm [thread:$0]  %s2370_s12, 4096, %s4441_s6, [#allocation3], %s3057_s14, %s3057_s14, %s3058_s15  }
 0x1bc   :  { %3052 = dma.done.wait [#allocation3], 4096  }
 0x1bd   :  { %3053 = vsyncadd [#allocation3], 4294963200 }
 0x1be   :  { %2379 = vsyncpa [#allocation3], 1 }

</bundles_post_ra>
